<compile_context>
chip_gen: v6e
topology: v6e:2x2x1
jax: 0.10.0
libtpu: 0.0.40
codegen_flags: <defaults>
</compile_context>

<pallas_src>
import math
from functools import partial

import jax
import jax.numpy as jnp
from jax.experimental import pallas as pl
from jax.experimental.pallas import tpu as pltpu

LANE = 128


def _round_up(x, m):
    return (x + m - 1) // m * m


def _vmem_limit_bytes(block_bytes, scratch_bytes=0):
    """2x (double-buffer) each block + scratch + slack, clamped to a sane range."""
    need = 2 * block_bytes + scratch_bytes + (4 << 20)
    return int(min(96 << 20, max(need, 16 << 20)))


# ----------------------------- Pallas kernels ------------------------------

def _backbone_fused_kernel(patch_ref, w_ref, b_ref, a_ref,
                           fcw_ref, scale_ref, shift_ref,
                           emb_ref, acc_ref,
                           *, inv_hw, hw, tile_m, needs_mask):
    """One (image, row-tile) step: im2col-matmul + bias + PReLU accumulated into a
    per-image GAP partial sum; last row tile also runs Linear + BN1d + l2_norm."""
    j = pl.program_id(1)

    @pl.when(j == 0)
    def _init():
        acc_ref[...] = jnp.zeros_like(acc_ref)

    # (TM, Kp)bf16 @ (Kp, CP)bf16 -> f32 on the MXU (Kp, CP lane-dense / 128-padded)
    y = jnp.dot(patch_ref[0], w_ref[...], preferred_element_type=jnp.float32)
    y = y + b_ref[...]
    y = jnp.where(y > 0, y, a_ref[...] * y)                 # per-channel PReLU
    if needs_mask:                                          # partial last row tile
        row = j * tile_m + jax.lax.broadcasted_iota(jnp.int32, y.shape, 0)
        y = jnp.where(row < hw, y, 0.0)
    acc_ref[...] += jnp.sum(y, axis=0, keepdims=True)       # partial GAP sum (XLU)

    @pl.when(j == pl.num_programs(1) - 1)
    def _finalize():
        pooled = acc_ref[...] * inv_hw                       # (1, CP) f32
        z = jnp.dot(pooled.astype(jnp.bfloat16), fcw_ref[...],
                    preferred_element_type=jnp.float32)      # (1, 512)
        z = z * scale_ref[...] + shift_ref[...]              # Linear bias + BN1d folded
        inv = jax.lax.rsqrt(jnp.sum(z * z, axis=-1, keepdims=True) + 1e-12)
        emb_ref[0] = z * inv                                 # l2-normalized embedding


def _arcface_ce_kernel(emb_ref, label_ref, w_ref, bias_ref, loss_ref,
                       m_sc, l_sc, tgt_sc, *, s, m, tile_n):
    """Class-outer Arcface margin logits + softmax cross-entropy with online LSE.
    The whole batch's embedding and (B,1) accumulators stay resident in VMEM; each
    pre-normalized (512, tile_n) weight tile is streamed exactly once."""
    t = pl.program_id(0)

    @pl.when(t == 0)
    def _init():
        m_sc[...] = jnp.full_like(m_sc, -1e30)
        l_sc[...] = jnp.zeros_like(l_sc)
        tgt_sc[...] = jnp.zeros_like(tgt_sc)

    cos_m = math.cos(m)
    sin_m = math.sin(m)
    mm = sin_m * m
    threshold = math.cos(math.pi - m)

    # (B, 512)bf16 @ (512, TN)bf16 -> f32 (weight already column-l2-normalized)
    cos_t = jnp.dot(emb_ref[...].astype(jnp.bfloat16), w_ref[...],
                    preferred_element_type=jnp.float32)
    cos_t = jnp.clip(cos_t, -1.0, 1.0)                      # matches head's clamp(-1, 1)

    # labels are assumed < n_person (same contract as nn.CrossEntropyLoss), so the
    # one-hot match can never land on a padded column.
    col = t * tile_n + jax.lax.broadcasted_iota(jnp.int32, cos_t.shape, 1)
    onehot = col == label_ref[...]                          # (B, TN)

    # additive angular margin on the target column only (cheap (B, 1) math)
    cos_y = jnp.sum(jnp.where(onehot, cos_t, 0.0), axis=1, keepdims=True)
    sin_y = jnp.sqrt(jnp.maximum(1.0 - cos_y * cos_y, 0.0))
    cos_y_m = cos_y * cos_m - sin_y * sin_m
    cos_y_m = jnp.where(cos_y - threshold <= 0, cos_y - mm, cos_y_m)

    # bias is 0 for valid classes, -1e30 for padded columns (precomputed in wrapper)
    theta = jnp.where(onehot, cos_y_m, cos_t) * s + bias_ref[...]

    # online logsumexp across class tiles
    m_prev = m_sc[...]
    m_new = jnp.maximum(m_prev, jnp.max(theta, axis=1, keepdims=True))
    l_sc[...] = l_sc[...] * jnp.exp(m_prev - m_new) + \
        jnp.sum(jnp.exp(theta - m_new), axis=1, keepdims=True)
    m_sc[...] = m_new
    tgt_sc[...] += jnp.sum(jnp.where(onehot, theta, 0.0), axis=1, keepdims=True)

    @pl.when(t == pl.num_programs(0) - 1)
    def _finalize():
        lse = m_sc[...] + jnp.log(l_sc[...])
        loss_ref[...] = jnp.sum(lse - tgt_sc[...]) * jnp.ones((1, LANE), jnp.float32)


# ------------------------------ JAX wrappers --------------------------------

def backbone_forward(x_nchw, params, *, tile_m=512):
    """Fused conv3x3(same) + PReLU + GAP + Linear + BN1d + l2_norm -> (B, 512) f32."""
    B, C, H, W = x_nchw.shape
    conv_w = params["conv_w"]
    cout = conv_w.shape[0]
    cp = _round_up(max(cout, LANE), LANE)
    K = C * 9
    kp = _round_up(K, LANE)                                  # lane-dense im2col K
    HW = H * W

    # TODO(synk): move im2col in-kernel (9 shifted taps over a halo block) to drop the
    #   remaining read amplification; kept lane-dense in bf16 here.
    xp = jnp.pad(x_nchw, ((0, 0), (0, 0), (1, 1), (1, 1)))
    cols = [xp[:, :, kh:kh + H, kw:kw + W] for kh in range(3) for kw in range(3)]
    patches = jnp.stack(cols, axis=2)                        # (B, C, 9, H, W)
    patches = patches.transpose(0, 3, 4, 1, 2).reshape(B, HW, K)

    tm = min(tile_m, _round_up(HW, 8))
    hw_pad = _round_up(HW, tm)
    needs_mask = hw_pad != HW
    nrt = hw_pad // tm
    patches = jnp.pad(patches, ((0, 0), (0, hw_pad - HW), (0, kp - K))
                      ).astype(jnp.bfloat16)                 # (B, hw_pad, kp)

    w2 = conv_w.reshape(cout, K).T                           # (K, cout)
    w2 = jnp.pad(w2, ((0, kp - K), (0, cp - cout))).astype(jnp.bfloat16)
    b2 = jnp.pad(params["conv_b"], (0, cp - cout)).reshape(1, cp).astype(jnp.float32)
    a2 = jnp.pad(params["prelu_a"], (0, cp - cout)).reshape(1, cp).astype(jnp.float32)

    fc_w = params["fc_w"]
    cmid, emb_dim = fc_w.shape
    fcw = jnp.pad(fc_w, ((0, cp - cmid), (0, 0))).astype(jnp.bfloat16)    # (CP, 512)
    scale = params["bn_gamma"] * jax.lax.rsqrt(params["bn_var"] + 1e-5)
    shift = (params["fc_b"] - params["bn_mean"]) * scale + params["bn_beta"]
    scale = scale.reshape(1, emb_dim).astype(jnp.float32)
    shift = shift.reshape(1, emb_dim).astype(jnp.float32)

    block_bytes = (tm * kp * 2 + kp * cp * 2 + 2 * cp * 4 +
                   cp * emb_dim * 2 + 2 * emb_dim * 4 + emb_dim * 4)

    emb = pl.pallas_call(
        partial(_backbone_fused_kernel, inv_hw=1.0 / HW, hw=HW, tile_m=tm,
                needs_mask=needs_mask),
        out_shape=jax.ShapeDtypeStruct((B, 1, emb_dim), jnp.float32),
        grid=(B, nrt),
        in_specs=[
            pl.BlockSpec((1, tm, kp), lambda b, j: (b, j, 0)),
            pl.BlockSpec((kp, cp), lambda b, j: (0, 0)),
            pl.BlockSpec((1, cp), lambda b, j: (0, 0)),
            pl.BlockSpec((1, cp), lambda b, j: (0, 0)),
            pl.BlockSpec((cp, emb_dim), lambda b, j: (0, 0)),
            pl.BlockSpec((1, emb_dim), lambda b, j: (0, 0)),
            pl.BlockSpec((1, emb_dim), lambda b, j: (0, 0)),
        ],
        out_specs=pl.BlockSpec((1, 1, emb_dim), lambda b, j: (b, 0, 0)),
        scratch_shapes=[pltpu.VMEM((1, cp), jnp.float32)],
        compiler_params=pltpu.CompilerParams(
            dimension_semantics=("parallel", "arbitrary"),
            vmem_limit_bytes=_vmem_limit_bytes(block_bytes, cp * 4)),
    )(patches, w2, b2, a2, fcw, scale, shift)
    return emb.reshape(B, emb_dim)


def arcface_ce_loss(emb, labels, arc_kernel, *, s=64.0, m=0.5, tile_n=512):
    """Arcface margin + mean cross-entropy; class-outer streaming of the weight."""
    B, emb_dim = emb.shape
    n_person = arc_kernel.shape[1]

    # hoisted column l2-norm: computed ONCE per forward, in f32, then cast to bf16
    wn = arc_kernel * jax.lax.rsqrt(
        jnp.sum(arc_kernel * arc_kernel, axis=0, keepdims=True) + 1e-10)

    tn = min(tile_n, _round_up(n_person, LANE))
    np_pad = _round_up(n_person, tn)                         # every tile has >=1 valid col
    wn = jnp.pad(wn, ((0, 0), (0, np_pad - n_person))).astype(jnp.bfloat16)
    bias = jnp.where(jnp.arange(np_pad) < n_person, 0.0, -1e30
                     ).reshape(1, np_pad).astype(jnp.float32)
    labels2 = labels.reshape(B, 1).astype(jnp.int32)
    ntiles = np_pad // tn

    block_bytes = B * emb_dim * 4 + B * 4 + emb_dim * tn * 2 + tn * 4 + LANE * 4

    loss_part = pl.pallas_call(
        partial(_arcface_ce_kernel, s=s, m=m, tile_n=tn),
        out_shape=jax.ShapeDtypeStruct((1, LANE), jnp.float32),
        grid=(ntiles,),
        in_specs=[
            pl.BlockSpec((B, emb_dim), lambda t: (0, 0)),    # resident across class tiles
            pl.BlockSpec((B, 1), lambda t: (0, 0)),
            pl.BlockSpec((emb_dim, tn), lambda t: (0, t)),   # streamed exactly once
            pl.BlockSpec((1, tn), lambda t: (0, t)),
        ],
        out_specs=pl.BlockSpec((1, LANE), lambda t: (0, 0)),
        scratch_shapes=[pltpu.VMEM((B, 1), jnp.float32)] * 3,
        compiler_params=pltpu.CompilerParams(
            dimension_semantics=("arbitrary",),
            vmem_limit_bytes=_vmem_limit_bytes(block_bytes, 3 * B * 4)),
    )(emb, labels2, wn, bias)
    return loss_part[0, 0] / B


def insightface_forward_train(x_nchw, labels, params, *, s=64.0, m=0.5,
                              tile_m=512, tile_n=512):
    emb = backbone_forward(x_nchw, params, tile_m=tile_m)
    loss = arcface_ce_loss(emb, labels, params["arc_kernel"], s=s, m=m, tile_n=tile_n)
    return dict(loss=loss, embedding_features=emb)


def insightface_forward_test(x_nchw, params, *, tile_m=512):
    return dict(embedding_features=backbone_forward(x_nchw, params, tile_m=tile_m))


# ------------------ pure-JAX reference (same cast points) --------------------

def _reference_forward_train(x, labels, params, *, s=64.0, m=0.5):
    B, C, H, W = x.shape
    cout = params["conv_w"].shape[0]
    K = C * 9
    xp = jnp.pad(x, ((0, 0), (0, 0), (1, 1), (1, 1)))
    cols = [xp[:, :, kh:kh + H, kw:kw + W] for kh in range(3) for kw in range(3)]
    patches = jnp.stack(cols, axis=2).transpose(0, 3, 4, 1, 2).reshape(B * H * W, K)
    w2 = params["conv_w"].reshape(cout, K).T
    y = jnp.dot(patches.astype(jnp.bfloat16), w2.astype(jnp.bfloat16),
                preferred_element_type=jnp.float32) + params["conv_b"]
    y = jnp.where(y > 0, y, params["prelu_a"] * y)
    pooled = jnp.mean(y.reshape(B, H * W, cout), axis=1)

    z = jnp.dot(pooled.astype(jnp.bfloat16), params["fc_w"].astype(jnp.bfloat16),
                preferred_element_type=jnp.float32)
    scale = params["bn_gamma"] * jax.lax.rsqrt(params["bn_var"] + 1e-5)
    shift = (params["fc_b"] - params["bn_mean"]) * scale + params["bn_beta"]
    z = z * scale + shift
    emb = z * jax.lax.rsqrt(jnp.sum(z * z, axis=-1, keepdims=True) + 1e-12)

    wk = params["arc_kernel"]
    wn = wk * jax.lax.rsqrt(jnp.sum(wk * wk, axis=0, keepdims=True) + 1e-10)
    cos_t = jnp.dot(emb.astype(jnp.bfloat16), wn.astype(jnp.bfloat16),
                    preferred_element_type=jnp.float32)
    cos_t = jnp.clip(cos_t, -1.0, 1.0)
    sin_t = jnp.sqrt(jnp.maximum(1.0 - cos_t * cos_t, 0.0))
    cos_t_m = cos_t * math.cos(m) - sin_t * math.sin(m)
    cos_t_m = jnp.where(cos_t - math.cos(math.pi - m) <= 0,
                        cos_t - math.sin(m) * m, cos_t_m)
    onehot = jax.nn.one_hot(labels, cos_t.shape[1], dtype=jnp.bool_)
    thetas = jnp.where(onehot, cos_t_m, cos_t) * s
    mx = jnp.max(thetas, axis=1, keepdims=True)
    lse = mx[:, 0] + jnp.log(jnp.sum(jnp.exp(thetas - mx), axis=1))
    tgt = jnp.sum(jnp.where(onehot, thetas, 0.0), axis=1)
    return jnp.mean(lse - tgt), emb


# ---------------------------------- main -------------------------------------

def make_params(key, cin=3, cmid=32, emb_dim=512, n_person=123):
    ks = jax.random.split(key, 5)
    conv_w = 0.1 * jax.random.normal(ks[0], (cmid, cin, 3, 3), jnp.float32)
    conv_b = 0.01 * jax.random.normal(ks[1], (cmid,), jnp.float32)
    prelu_a = jnp.full((cmid,), 0.25, jnp.float32)            # PyTorch PReLU default
    fc_w = 0.05 * jax.random.normal(ks[2], (cmid, emb_dim), jnp.float32)
    fc_b = 0.01 * jax.random.normal(ks[3], (emb_dim,), jnp.float32)
    bn_gamma = jnp.ones((emb_dim,), jnp.float32)
    bn_beta = jnp.zeros((emb_dim,), jnp.float32)
    bn_mean = jnp.zeros((emb_dim,), jnp.float32)
    bn_var = jnp.ones((emb_dim,), jnp.float32)
    # Arcface kernel: uniform(-1,1).renorm_(2,1,1e-5).mul_(1e5) ~ column-normalized uniform
    arc_kernel = jax.random.uniform(ks[4], (emb_dim, n_person), jnp.float32, -1.0, 1.0)
    arc_kernel = arc_kernel / jnp.linalg.norm(arc_kernel, axis=0, keepdims=True)
    return dict(conv_w=conv_w, conv_b=conv_b, prelu_a=prelu_a,
                fc_w=fc_w, fc_b=fc_b,
                bn_gamma=bn_gamma, bn_beta=bn_beta, bn_mean=bn_mean, bn_var=bn_var,
                arc_kernel=arc_kernel)


if __name__ == "__main__":
    key = jax.random.PRNGKey(0)
    k_x, k_p, k_l = jax.random.split(key, 3)

    B, C, H, W = 2, 3, 18, 18
    n_person = 1200                      # 3 class tiles of 512 -> exercises online LSE + padded-class mask
    x = jax.random.normal(k_x, (B, C, H, W), jnp.float32)     # NCHW, like PyTorch
    labels = jax.random.randint(k_l, (B,), 0, n_person, jnp.int32)
    params = make_params(k_p, cin=C, n_person=n_person)

    # tile_m=128 on this toy 18x18 map exercises the multi-row-tile GAP accumulation
    # and the masked partial last tile (HW=324 -> 3 tiles); production default is 512.
    fwd = jax.jit(partial(insightface_forward_train, tile_m=128))
    out = fwd(x, labels, params)
    loss = float(jax.block_until_ready(out["loss"]))
    emb = jax.block_until_ready(out["embedding_features"])

    ref_loss, ref_emb = _reference_forward_train(x, labels, params)
    ref_loss = float(ref_loss)

    assert emb.shape == (B, 512)
    assert bool(jnp.all(jnp.isfinite(emb))) and math.isfinite(loss)
    assert bool(jnp.allclose(emb, ref_emb, atol=5e-3, rtol=5e-2)), "embedding mismatch"
    assert abs(loss - ref_loss) <= 0.1 + 0.02 * abs(ref_loss), (loss, ref_loss)
    print("KERNEL_OK")
</pallas_src>

<mosaic_0001>
module attributes {stable_mosaic.version = 11 : i64} {
  func.func @_backbone_fused_kernel(%arg0: i32, %arg1: i32, %arg2: memref<1x128x128xbf16, #tpu.memory_space<vmem>>, %arg3: memref<128x128xbf16, #tpu.memory_space<vmem>>, %arg4: memref<1x128xf32, #tpu.memory_space<vmem>>, %arg5: memref<1x128xf32, #tpu.memory_space<vmem>>, %arg6: memref<128x512xbf16, #tpu.memory_space<vmem>>, %arg7: memref<1x512xf32, #tpu.memory_space<vmem>>, %arg8: memref<1x512xf32, #tpu.memory_space<vmem>>, %arg9: memref<1x1x512xf32, #tpu.memory_space<vmem>>, %arg10: memref<1x128xf32, #tpu.memory_space<vmem>>) attributes {dimension_semantics = [#tpu.dimension_semantics<parallel>, #tpu.dimension_semantics<arbitrary>], iteration_bounds = array<i64: 2, 3>, scalar_prefetch = 0 : i64, scratch_operands = 1 : i64, tpu.core_type = #tpu.core_type<tc>, window_params = [{transform_indices = @transform_0, window_bounds = array<i64: 1, 128, 128>}, {pipeline_mode = #tpu.pipeline_mode<synchronous>, transform_indices = @transform_1, window_bounds = array<i64: 128, 128>}, {pipeline_mode = #tpu.pipeline_mode<synchronous>, transform_indices = @transform_2, window_bounds = array<i64: 1, 128>}, {pipeline_mode = #tpu.pipeline_mode<synchronous>, transform_indices = @transform_3, window_bounds = array<i64: 1, 128>}, {pipeline_mode = #tpu.pipeline_mode<synchronous>, transform_indices = @transform_4, window_bounds = array<i64: 128, 512>}, {pipeline_mode = #tpu.pipeline_mode<synchronous>, transform_indices = @transform_5, window_bounds = array<i64: 1, 512>}, {pipeline_mode = #tpu.pipeline_mode<synchronous>, transform_indices = @transform_6, window_bounds = array<i64: 1, 512>}, {transform_indices = @transform_7, window_bounds = array<i64: 1, 1, 512>}]} {
    %c0_i32 = arith.constant 0 : i32
    %0 = arith.cmpi eq, %arg1, %c0_i32 : i32
    %1 = arith.extui %0 : i1 to i32
    %c0_i32_0 = arith.constant 0 : i32
    %2 = arith.cmpi ne, %1, %c0_i32_0 : i32
    scf.if %2 {
      %cst_17 = arith.constant 0.000000e+00 : f32
      %32 = vector.broadcast %cst_17 : f32 to vector<1x128xf32>
      %c0_18 = arith.constant 0 : index
      %c0_19 = arith.constant 0 : index
      %33 = vector.load %arg10[%c0_18, %c0_19] : memref<1x128xf32, #tpu.memory_space<vmem>>, vector<1x128xf32>
      tpu.vector_store %arg10[%c0_18, %c0_19], %32 {strides = array<i32>} : memref<1x128xf32, #tpu.memory_space<vmem>>, vector<1x128xf32>,
    } else {
    }
    %c0 = arith.constant 0 : index
    %c0_1 = arith.constant 0 : index
    %c0_2 = arith.constant 0 : index
    %3 = vector.load %arg2[%c0, %c0_1, %c0_2] : memref<1x128x128xbf16, #tpu.memory_space<vmem>>, vector<1x128x128xbf16>
    %4 = vector.shape_cast %3 : vector<1x128x128xbf16> to vector<128x128xbf16>
    %c0_3 = arith.constant 0 : index
    %c0_4 = arith.constant 0 : index
    %5 = vector.load %arg3[%c0_3, %c0_4] : memref<128x128xbf16, #tpu.memory_space<vmem>>, vector<128x128xbf16>
    %cst = arith.constant dense<0.000000e+00> : vector<128x128xf32>
    %6 = tpu.matmul %4, %5, %cst {dimension_numbers = #tpu.dot_dimension_numbers<[1], [0], [0], [1], [0, 0, 1, 1], [], []>} : vector<128x128xbf16>, vector<128x128xbf16>, vector<128x128xf32> -> vector<128x128xf32>
    %c0_5 = arith.constant 0 : index
    %c0_6 = arith.constant 0 : index
    %7 = vector.load %arg4[%c0_5, %c0_6] : memref<1x128xf32, #tpu.memory_space<vmem>>, vector<1x128xf32>
    %8 = vector.broadcast %7 : vector<1x128xf32> to vector<128x128xf32>
    %9 = arith.addf %6, %8 : vector<128x128xf32>
    %cst_7 = arith.constant 0.000000e+00 : f32
    %10 = vector.broadcast %cst_7 : f32 to vector<128x128xf32>
    %11 = arith.cmpf ogt, %9, %10 : vector<128x128xf32>
    %c0_8 = arith.constant 0 : index
    %c0_9 = arith.constant 0 : index
    %12 = vector.load %arg5[%c0_8, %c0_9] : memref<1x128xf32, #tpu.memory_space<vmem>>, vector<1x128xf32>
    %13 = vector.broadcast %12 : vector<1x128xf32> to vector<128x128xf32>
    %14 = arith.mulf %13, %9 : vector<128x128xf32>
    %15 = arith.select %11, %9, %14 : vector<128x128xi1>, vector<128x128xf32>
    %c128_i32 = arith.constant 128 : i32
    %16 = arith.muli %arg1, %c128_i32 : i32
    %17 = tpu.iota {dimensions = array<i32: 0>} : vector<128x128xi32>
    %18 = vector.broadcast %16 : i32 to vector<128x128xi32>
    %19 = arith.addi %18, %17 : vector<128x128xi32>
    %c324_i32 = arith.constant 324 : i32
    %20 = vector.broadcast %c324_i32 : i32 to vector<128x128xi32>
    %21 = arith.cmpi slt, %19, %20 : vector<128x128xi32>
    %cst_10 = arith.constant 0.000000e+00 : f32
    %22 = vector.broadcast %cst_10 : f32 to vector<128x128xf32>
    %23 = arith.select %21, %15, %22 : vector<128x128xi1>, vector<128x128xf32>
    %c0_11 = arith.constant 0 : index
    %c0_12 = arith.constant 0 : index
    %24 = vector.load %arg10[%c0_11, %c0_12] : memref<1x128xf32, #tpu.memory_space<vmem>>, vector<1x128xf32>
    %cst_13 = arith.constant dense<0.000000e+00> : vector<128xf32>
    %25 = vector.multi_reduction <add>, %23, %cst_13 [0] : vector<128x128xf32> to vector<128xf32>
    %26 = vector.shape_cast %25 : vector<128xf32> to vector<1x128xf32>
    %27 = arith.addf %24, %26 : vector<1x128xf32>
    %c0_14 = arith.constant 0 : index
    %c0_15 = arith.constant 0 : index
    %28 = vector.load %arg10[%c0_14, %c0_15] : memref<1x128xf32, #tpu.memory_space<vmem>>, vector<1x128xf32>
    tpu.vector_store %arg10[%c0_14, %c0_15], %27 {strides = array<i32>} : memref<1x128xf32, #tpu.memory_space<vmem>>, vector<1x128xf32>,
    %c2_i32 = arith.constant 2 : i32
    %29 = arith.cmpi eq, %arg1, %c2_i32 : i32
    %30 = arith.extui %29 : i1 to i32
    %c0_i32_16 = arith.constant 0 : i32
    %31 = arith.cmpi ne, %30, %c0_i32_16 : i32
    scf.if %31 {
      %c0_17 = arith.constant 0 : index
      %c0_18 = arith.constant 0 : index
      %32 = vector.load %arg10[%c0_17, %c0_18] : memref<1x128xf32, #tpu.memory_space<vmem>>, vector<1x128xf32>
      %cst_19 = arith.constant 0.00308641978 : f32
      %33 = vector.broadcast %cst_19 : f32 to vector<1x128xf32>
      %34 = arith.mulf %32, %33 : vector<1x128xf32>
      %35 = arith.truncf %34 : vector<1x128xf32> to vector<1x128xbf16>
      %c0_20 = arith.constant 0 : index
      %c0_21 = arith.constant 0 : index
      %36 = vector.load %arg6[%c0_20, %c0_21] : memref<128x512xbf16, #tpu.memory_space<vmem>>, vector<128x512xbf16>
      %cst_22 = arith.constant dense<0.000000e+00> : vector<1x512xf32>
      %37 = tpu.matmul %35, %36, %cst_22 {dimension_numbers = #tpu.dot_dimension_numbers<[1], [0], [0], [1], [0, 0, 1, 1], [], []>} : vector<1x128xbf16>, vector<128x512xbf16>, vector<1x512xf32> -> vector<1x512xf32>
      %c0_23 = arith.constant 0 : index
      %c0_24 = arith.constant 0 : index
      %38 = vector.load %arg7[%c0_23, %c0_24] : memref<1x512xf32, #tpu.memory_space<vmem>>, vector<1x512xf32>
      %39 = arith.mulf %37, %38 : vector<1x512xf32>
      %c0_25 = arith.constant 0 : index
      %c0_26 = arith.constant 0 : index
      %40 = vector.load %arg8[%c0_25, %c0_26] : memref<1x512xf32, #tpu.memory_space<vmem>>, vector<1x512xf32>
      %41 = arith.addf %39, %40 : vector<1x512xf32>
      %42 = arith.mulf %41, %41 : vector<1x512xf32>
      %cst_27 = arith.constant dense<0.000000e+00> : vector<1xf32>
      %43 = vector.multi_reduction <add>, %42, %cst_27 [1] : vector<1x512xf32> to vector<1xf32>
      %44 = vector.shape_cast %43 : vector<1xf32> to vector<1x1xf32>
      %cst_28 = arith.constant 9.99999996E-13 : f32
      %45 = vector.broadcast %cst_28 : f32 to vector<1x1xf32>
      %46 = arith.addf %44, %45 : vector<1x1xf32>
      %47 = math.rsqrt %46 : vector<1x1xf32>
      %48 = vector.broadcast %47 : vector<1x1xf32> to vector<1x512xf32>
      %49 = arith.mulf %41, %48 : vector<1x512xf32>
      %c0_29 = arith.constant 0 : index
      %c0_30 = arith.constant 0 : index
      %c0_31 = arith.constant 0 : index
      %50 = vector.load %arg9[%c0_29, %c0_30, %c0_31] : memref<1x1x512xf32, #tpu.memory_space<vmem>>, vector<1x1x512xf32>
      %51 = vector.shape_cast %50 : vector<1x1x512xf32> to vector<1x512xf32>
      %52 = vector.shape_cast %49 : vector<1x512xf32> to vector<1x1x512xf32>
      tpu.vector_store %arg9[%c0_29, %c0_30, %c0_31], %52 {strides = array<i32>} : memref<1x1x512xf32, #tpu.memory_space<vmem>>, vector<1x1x512xf32>,
    } else {
    }
    return
  }
  func.func @transform_0(%arg0: i32, %arg1: i32) -> (i32, i32, i32) {
    %c0_i32 = arith.constant 0 : i32
    %c0_i32_0 = arith.constant 0 : i32
    return %arg0, %arg1, %c0_i32 : i32, i32, i32
  }
  func.func @transform_1(%arg0: i32, %arg1: i32) -> (i32, i32) {
    %c0_i32 = arith.constant 0 : i32
    %c0_i32_0 = arith.constant 0 : i32
    %c0_i32_1 = arith.constant 0 : i32
    return %c0_i32, %c0_i32_0 : i32, i32
  }
  func.func @transform_2(%arg0: i32, %arg1: i32) -> (i32, i32) {
    %c0_i32 = arith.constant 0 : i32
    %c0_i32_0 = arith.constant 0 : i32
    %c0_i32_1 = arith.constant 0 : i32
    return %c0_i32, %c0_i32_0 : i32, i32
  }
  func.func @transform_3(%arg0: i32, %arg1: i32) -> (i32, i32) {
    %c0_i32 = arith.constant 0 : i32
    %c0_i32_0 = arith.constant 0 : i32
    %c0_i32_1 = arith.constant 0 : i32
    return %c0_i32, %c0_i32_0 : i32, i32
  }
  func.func @transform_4(%arg0: i32, %arg1: i32) -> (i32, i32) {
    %c0_i32 = arith.constant 0 : i32
    %c0_i32_0 = arith.constant 0 : i32
    %c0_i32_1 = arith.constant 0 : i32
    return %c0_i32, %c0_i32_0 : i32, i32
  }
  func.func @transform_5(%arg0: i32, %arg1: i32) -> (i32, i32) {
    %c0_i32 = arith.constant 0 : i32
    %c0_i32_0 = arith.constant 0 : i32
    %c0_i32_1 = arith.constant 0 : i32
    return %c0_i32, %c0_i32_0 : i32, i32
  }
  func.func @transform_6(%arg0: i32, %arg1: i32) -> (i32, i32) {
    %c0_i32 = arith.constant 0 : i32
    %c0_i32_0 = arith.constant 0 : i32
    %c0_i32_1 = arith.constant 0 : i32
    return %c0_i32, %c0_i32_0 : i32, i32
  }
  func.func @transform_7(%arg0: i32, %arg1: i32) -> (i32, i32, i32) {
    %c0_i32 = arith.constant 0 : i32
    %c0_i32_0 = arith.constant 0 : i32
    %c0_i32_1 = arith.constant 0 : i32
    return %arg0, %c0_i32, %c0_i32_0 : i32, i32, i32
  }
}

module attributes {stable_mosaic.version = 11 : i64} {
  func.func @_arcface_ce_kernel(%arg0: i32, %arg1: memref<2x512xf32, #tpu.memory_space<vmem>>, %arg2: memref<2x1xi32, #tpu.memory_space<vmem>>, %arg3: memref<512x512xbf16, #tpu.memory_space<vmem>>, %arg4: memref<1x512xf32, #tpu.memory_space<vmem>>, %arg5: memref<1x128xf32, #tpu.memory_space<vmem>>, %arg6: memref<2x1xf32, #tpu.memory_space<vmem>>, %arg7: memref<2x1xf32, #tpu.memory_space<vmem>>, %arg8: memref<2x1xf32, #tpu.memory_space<vmem>>) attributes {dimension_semantics = [#tpu.dimension_semantics<arbitrary>], iteration_bounds = array<i64: 3>, scalar_prefetch = 0 : i64, scratch_operands = 3 : i64, tpu.core_type = #tpu.core_type<tc>, window_params = [{pipeline_mode = #tpu.pipeline_mode<synchronous>, transform_indices = @transform_0, window_bounds = array<i64: 2, 512>}, {pipeline_mode = #tpu.pipeline_mode<synchronous>, transform_indices = @transform_1, window_bounds = array<i64: 2, 1>}, {transform_indices = @transform_2, window_bounds = array<i64: 512, 512>}, {transform_indices = @transform_3, window_bounds = array<i64: 1, 512>}, {pipeline_mode = #tpu.pipeline_mode<synchronous>, transform_indices = @transform_4, window_bounds = array<i64: 1, 128>}]} {
    %c0_i32 = arith.constant 0 : i32
    %0 = arith.cmpi eq, %arg0, %c0_i32 : i32
    %1 = arith.extui %0 : i1 to i32
    %c0_i32_0 = arith.constant 0 : i32
    %2 = arith.cmpi ne, %1, %c0_i32_0 : i32
    scf.if %2 {
      %cst_37 = arith.constant -1.000000e+30 : f32
      %74 = vector.broadcast %cst_37 : f32 to vector<2x1xf32>
      %c0_38 = arith.constant 0 : index
      %c0_39 = arith.constant 0 : index
      %75 = vector.load %arg6[%c0_38, %c0_39] : memref<2x1xf32, #tpu.memory_space<vmem>>, vector<2x1xf32>
      tpu.vector_store %arg6[%c0_38, %c0_39], %74 {strides = array<i32>} : memref<2x1xf32, #tpu.memory_space<vmem>>, vector<2x1xf32>,
      %cst_40 = arith.constant 0.000000e+00 : f32
      %76 = vector.broadcast %cst_40 : f32 to vector<2x1xf32>
      %c0_41 = arith.constant 0 : index
      %c0_42 = arith.constant 0 : index
      %77 = vector.load %arg7[%c0_41, %c0_42] : memref<2x1xf32, #tpu.memory_space<vmem>>, vector<2x1xf32>
      tpu.vector_store %arg7[%c0_41, %c0_42], %76 {strides = array<i32>} : memref<2x1xf32, #tpu.memory_space<vmem>>, vector<2x1xf32>,
      %cst_43 = arith.constant 0.000000e+00 : f32
      %78 = vector.broadcast %cst_43 : f32 to vector<2x1xf32>
      %c0_44 = arith.constant 0 : index
      %c0_45 = arith.constant 0 : index
      %79 = vector.load %arg8[%c0_44, %c0_45] : memref<2x1xf32, #tpu.memory_space<vmem>>, vector<2x1xf32>
      tpu.vector_store %arg8[%c0_44, %c0_45], %78 {strides = array<i32>} : memref<2x1xf32, #tpu.memory_space<vmem>>, vector<2x1xf32>,
    } else {
    }
    %c0 = arith.constant 0 : index
    %c0_1 = arith.constant 0 : index
    %3 = vector.load %arg1[%c0, %c0_1] : memref<2x512xf32, #tpu.memory_space<vmem>>, vector<2x512xf32>
    %4 = arith.truncf %3 : vector<2x512xf32> to vector<2x512xbf16>
    %c0_2 = arith.constant 0 : index
    %c0_3 = arith.constant 0 : index
    %5 = vector.load %arg3[%c0_2, %c0_3] : memref<512x512xbf16, #tpu.memory_space<vmem>>, vector<512x512xbf16>
    %cst = arith.constant dense<0.000000e+00> : vector<2x512xf32>
    %6 = tpu.matmul %4, %5, %cst {dimension_numbers = #tpu.dot_dimension_numbers<[1], [0], [0], [1], [0, 0, 1, 1], [], []>} : vector<2x512xbf16>, vector<512x512xbf16>, vector<2x512xf32> -> vector<2x512xf32>
    %cst_4 = arith.constant -1.000000e+00 : f32
    %cst_5 = arith.constant 1.000000e+00 : f32
    %7 = vector.broadcast %cst_4 : f32 to vector<2x512xf32>
    %8 = arith.maximumf %7, %6 : vector<2x512xf32>
    %9 = vector.broadcast %cst_5 : f32 to vector<2x512xf32>
    %10 = arith.minimumf %9, %8 : vector<2x512xf32>
    %c512_i32 = arith.constant 512 : i32
    %11 = arith.muli %arg0, %c512_i32 : i32
    %12 = tpu.iota {dimensions = array<i32: 1>} : vector<2x512xi32>
    %13 = vector.broadcast %11 : i32 to vector<2x512xi32>
    %14 = arith.addi %13, %12 : vector<2x512xi32>
    %c0_6 = arith.constant 0 : index
    %c0_7 = arith.constant 0 : index
    %15 = vector.load %arg2[%c0_6, %c0_7] : memref<2x1xi32, #tpu.memory_space<vmem>>, vector<2x1xi32>
    %16 = vector.broadcast %15 : vector<2x1xi32> to vector<2x512xi32>
    %17 = arith.cmpi eq, %14, %16 : vector<2x512xi32>
    %cst_8 = arith.constant 0.000000e+00 : f32
    %18 = vector.broadcast %cst_8 : f32 to vector<2x512xf32>
    %19 = arith.select %17, %10, %18 : vector<2x512xi1>, vector<2x512xf32>
    %cst_9 = arith.constant dense<0.000000e+00> : vector<2xf32>
    %20 = vector.multi_reduction <add>, %19, %cst_9 [1] : vector<2x512xf32> to vector<2xf32>
    %21 = vector.shape_cast %20 : vector<2xf32> to vector<2x1xf32>
    %22 = arith.mulf %21, %21 : vector<2x1xf32>
    %cst_10 = arith.constant 1.000000e+00 : f32
    %23 = vector.broadcast %cst_10 : f32 to vector<2x1xf32>
    %24 = arith.subf %23, %22 : vector<2x1xf32>
    %cst_11 = arith.constant 0.000000e+00 : f32
    %25 = vector.broadcast %cst_11 : f32 to vector<2x1xf32>
    %26 = arith.maximumf %24, %25 : vector<2x1xf32>
    %27 = math.sqrt %26 : vector<2x1xf32>
    %cst_12 = arith.constant 0.87758255 : f32
    %28 = vector.broadcast %cst_12 : f32 to vector<2x1xf32>
    %29 = arith.mulf %21, %28 : vector<2x1xf32>
    %cst_13 = arith.constant 0.47942555 : f32
    %30 = vector.broadcast %cst_13 : f32 to vector<2x1xf32>
    %31 = arith.mulf %27, %30 : vector<2x1xf32>
    %32 = arith.subf %29, %31 : vector<2x1xf32>
    %cst_14 = arith.constant -0.87758255 : f32
    %33 = vector.broadcast %cst_14 : f32 to vector<2x1xf32>
    %34 = arith.subf %21, %33 : vector<2x1xf32>
    %cst_15 = arith.constant 0.000000e+00 : f32
    %35 = vector.broadcast %cst_15 : f32 to vector<2x1xf32>
    %36 = arith.cmpf ole, %34, %35 : vector<2x1xf32>
    %cst_16 = arith.constant 0.239712775 : f32
    %37 = vector.broadcast %cst_16 : f32 to vector<2x1xf32>
    %38 = arith.subf %21, %37 : vector<2x1xf32>
    %39 = arith.select %36, %38, %32 : vector<2x1xi1>, vector<2x1xf32>
    %40 = vector.shape_cast %39 : vector<2x1xf32> to vector<2x1xf32>
    %41 = vector.broadcast %40 : vector<2x1xf32> to vector<2x512xf32>
    %42 = arith.select %17, %41, %10 : vector<2x512xi1>, vector<2x512xf32>
    %cst_17 = arith.constant 6.400000e+01 : f32
    %43 = vector.broadcast %cst_17 : f32 to vector<2x512xf32>
    %44 = arith.mulf %42, %43 : vector<2x512xf32>
    %c0_18 = arith.constant 0 : index
    %c0_19 = arith.constant 0 : index
    %45 = vector.load %arg4[%c0_18, %c0_19] : memref<1x512xf32, #tpu.memory_space<vmem>>, vector<1x512xf32>
    %46 = vector.broadcast %45 : vector<1x512xf32> to vector<2x512xf32>
    %47 = arith.addf %44, %46 : vector<2x512xf32>
    %c0_20 = arith.constant 0 : index
    %c0_21 = arith.constant 0 : index
    %48 = vector.load %arg6[%c0_20, %c0_21] : memref<2x1xf32, #tpu.memory_space<vmem>>, vector<2x1xf32>
    %cst_22 = arith.constant dense<0xFF800000> : vector<2xf32>
    %49 = vector.multi_reduction <maximumf>, %47, %cst_22 [1] : vector<2x512xf32> to vector<2xf32>
    %50 = vector.shape_cast %49 : vector<2xf32> to vector<2x1xf32>
    %51 = arith.maximumf %48, %50 : vector<2x1xf32>
    %c0_23 = arith.constant 0 : index
    %c0_24 = arith.constant 0 : index
    %52 = vector.load %arg7[%c0_23, %c0_24] : memref<2x1xf32, #tpu.memory_space<vmem>>, vector<2x1xf32>
    %53 = arith.subf %48, %51 : vector<2x1xf32>
    %54 = math.exp %53 : vector<2x1xf32>
    %55 = arith.mulf %52, %54 : vector<2x1xf32>
    %56 = vector.broadcast %51 : vector<2x1xf32> to vector<2x512xf32>
    %57 = arith.subf %47, %56 : vector<2x512xf32>
    %58 = math.exp %57 : vector<2x512xf32>
    %cst_25 = arith.constant dense<0.000000e+00> : vector<2xf32>
    %59 = vector.multi_reduction <add>, %58, %cst_25 [1] : vector<2x512xf32> to vector<2xf32>
    %60 = vector.shape_cast %59 : vector<2xf32> to vector<2x1xf32>
    %61 = arith.addf %55, %60 : vector<2x1xf32>
    %c0_26 = arith.constant 0 : index
    %c0_27 = arith.constant 0 : index
    %62 = vector.load %arg7[%c0_26, %c0_27] : memref<2x1xf32, #tpu.memory_space<vmem>>, vector<2x1xf32>
    tpu.vector_store %arg7[%c0_26, %c0_27], %61 {strides = array<i32>} : memref<2x1xf32, #tpu.memory_space<vmem>>, vector<2x1xf32>,
    %c0_28 = arith.constant 0 : index
    %c0_29 = arith.constant 0 : index
    %63 = vector.load %arg6[%c0_28, %c0_29] : memref<2x1xf32, #tpu.memory_space<vmem>>, vector<2x1xf32>
    tpu.vector_store %arg6[%c0_28, %c0_29], %51 {strides = array<i32>} : memref<2x1xf32, #tpu.memory_space<vmem>>, vector<2x1xf32>,
    %c0_30 = arith.constant 0 : index
    %c0_31 = arith.constant 0 : index
    %64 = vector.load %arg8[%c0_30, %c0_31] : memref<2x1xf32, #tpu.memory_space<vmem>>, vector<2x1xf32>
    %cst_32 = arith.constant 0.000000e+00 : f32
    %65 = vector.broadcast %cst_32 : f32 to vector<2x512xf32>
    %66 = arith.select %17, %47, %65 : vector<2x512xi1>, vector<2x512xf32>
    %cst_33 = arith.constant dense<0.000000e+00> : vector<2xf32>
    %67 = vector.multi_reduction <add>, %66, %cst_33 [1] : vector<2x512xf32> to vector<2xf32>
    %68 = vector.shape_cast %67 : vector<2xf32> to vector<2x1xf32>
    %69 = arith.addf %64, %68 : vector<2x1xf32>
    %c0_34 = arith.constant 0 : index
    %c0_35 = arith.constant 0 : index
    %70 = vector.load %arg8[%c0_34, %c0_35] : memref<2x1xf32, #tpu.memory_space<vmem>>, vector<2x1xf32>
    tpu.vector_store %arg8[%c0_34, %c0_35], %69 {strides = array<i32>} : memref<2x1xf32, #tpu.memory_space<vmem>>, vector<2x1xf32>,
    %c2_i32 = arith.constant 2 : i32
    %71 = arith.cmpi eq, %arg0, %c2_i32 : i32
    %72 = arith.extui %71 : i1 to i32
    %c0_i32_36 = arith.constant 0 : i32
    %73 = arith.cmpi ne, %72, %c0_i32_36 : i32
    scf.if %73 {
      %c0_37 = arith.constant 0 : index
      %c0_38 = arith.constant 0 : index
      %74 = vector.load %arg6[%c0_37, %c0_38] : memref<2x1xf32, #tpu.memory_space<vmem>>, vector<2x1xf32>
      %c0_39 = arith.constant 0 : index
      %c0_40 = arith.constant 0 : index
      %75 = vector.load %arg7[%c0_39, %c0_40] : memref<2x1xf32, #tpu.memory_space<vmem>>, vector<2x1xf32>
      %76 = math.log %75 : vector<2x1xf32>
      %77 = arith.addf %74, %76 : vector<2x1xf32>
      %c0_41 = arith.constant 0 : index
      %c0_42 = arith.constant 0 : index
      %78 = vector.load %arg8[%c0_41, %c0_42] : memref<2x1xf32, #tpu.memory_space<vmem>>, vector<2x1xf32>
      %79 = arith.subf %77, %78 : vector<2x1xf32>
      %80 = vector.shape_cast %79 : vector<2x1xf32> to vector<1x2x1xf32>
      %cst_43 = arith.constant dense<0.000000e+00> : vector<1xf32>
      %81 = vector.multi_reduction <add>, %80, %cst_43 [1, 2] : vector<1x2x1xf32> to vector<1xf32>
      %82 = vector.shape_cast %81 : vector<1xf32> to vector<1x1x1xf32>
      %83 = vector.extract %82[0, 0, 0] : f32 from vector<1x1x1xf32>
      %cst_44 = arith.constant 1.000000e+00 : f32
      %84 = vector.broadcast %cst_44 : f32 to vector<1x128xf32>
      %85 = vector.broadcast %83 : f32 to vector<1x128xf32>
      %86 = arith.mulf %85, %84 : vector<1x128xf32>
      %c0_45 = arith.constant 0 : index
      %c0_46 = arith.constant 0 : index
      %87 = vector.load %arg5[%c0_45, %c0_46] : memref<1x128xf32, #tpu.memory_space<vmem>>, vector<1x128xf32>
      tpu.vector_store %arg5[%c0_45, %c0_46], %86 {strides = array<i32>} : memref<1x128xf32, #tpu.memory_space<vmem>>, vector<1x128xf32>,
    } else {
    }
    return
  }
  func.func @transform_0(%arg0: i32) -> (i32, i32) {
    %c0_i32 = arith.constant 0 : i32
    %c0_i32_0 = arith.constant 0 : i32
    %c0_i32_1 = arith.constant 0 : i32
    return %c0_i32, %c0_i32_0 : i32, i32
  }
  func.func @transform_1(%arg0: i32) -> (i32, i32) {
    %c0_i32 = arith.constant 0 : i32
    %c0_i32_0 = arith.constant 0 : i32
    %c0_i32_1 = arith.constant 0 : i32
    return %c0_i32, %c0_i32_0 : i32, i32
  }
  func.func @transform_2(%arg0: i32) -> (i32, i32) {
    %c0_i32 = arith.constant 0 : i32
    %c0_i32_0 = arith.constant 0 : i32
    return %c0_i32, %arg0 : i32, i32
  }
  func.func @transform_3(%arg0: i32) -> (i32, i32) {
    %c0_i32 = arith.constant 0 : i32
    %c0_i32_0 = arith.constant 0 : i32
    return %c0_i32, %arg0 : i32, i32
  }
  func.func @transform_4(%arg0: i32) -> (i32, i32) {
    %c0_i32 = arith.constant 0 : i32
    %c0_i32_0 = arith.constant 0 : i32
    %c0_i32_1 = arith.constant 0 : i32
    return %c0_i32, %c0_i32_0 : i32, i32
  }
}

</mosaic_0001>

<bundles_post_ra>
// kernel: insightface_forward_train.2
= control target key start
LH: loop header
LB: loop body
LE: loop exit
PB: predicated region body
PF: predicated region fallthrough
CT: control target
= control target key end

     0   :  { %s1466_s24 = smov 0   ;;  %s1468_s25 = smov 0   ;;  %s1792_s0 = inlined_call_operand.vmem [shape: bf16[2,384,128], index: 0, kind: input, shape index: {}]   ;;  %s1793_s1 = inlined_call_operand.vmem [shape: bf16[128,128], index: 1, kind: input, shape index: {}]   ;;  %s1794_s2 = inlined_call_operand.vmem [shape: f32[1,128], index: 2, kind: input, shape index: {}]   ;;  %s1795_s3 = inlined_call_operand.vmem [shape: f32[1,128], index: 3, kind: input, shape index: {}]   ;;  %s1796_s4 = inlined_call_operand.vmem [shape: bf16[128,512], index: 4, kind: input, shape index: {}]   ;;  %s1797_s5 = inlined_call_operand.vmem [shape: f32[1,512], index: 5, kind: input, shape index: {}]   ;;  %s1798_s6 = inlined_call_operand.vmem [shape: f32[1,512], index: 6, kind: input, shape index: {}]   ;;  %s1799_s7 = inlined_call_operand.vmem [shape: f32[2,1,512], index: 7, kind: output, shape index: {}]  }
   0x1   :  { %s1470_s26 = smov 0   ;;  %s1472_s27 = smov 0  }
   0x2   :  { %s1474_s28 = smov 0  }
   0x3 LB: > { %s26_s29 = sadd.s32 1, %s1413_s26  ;;  %s29_s30 = sadd.s32 1, %s1417_s27  ;;  %s1421_s28 = sphi %s1474_s28, %s17_s28   ;;  %s1417_s27 = sphi %s1472_s27, %s1803_s27   ;;  %s1413_s26 = sphi %s1470_s26, %s1802_s26   ;;  %s1409_s25 = sphi %s1468_s25, %s1801_s25   ;;  %s1405_s24 = sphi %s1466_s24, %s1800_s24  }
   0x4   : > { %p27_p0 = scmp.ge.s32.totalorder %s26_s29, 3  ;;  %p1150_p1 = scmp.ge.s32.totalorder %s1421_s28, 1 }
   0x5   : > { %p256_p2 = scmp.lt.s32.totalorder %s1421_s28, 7 }
   0x6   : > { %s1805_s29 = smov (%p27_p0, %s26_s29), 0  ;;  %s1807_s30 = smov (!%p27_p0, %s29_s30), %s1417_s27 }
   0x7   : > { %p257_p3 = pnand %p1150_p1, %p256_p2  ;;  %p31_p4 = scmp.ge.s32.totalorder %s1807_s30, 2 }
   0x8   : > { %s1151_s8 = sshll.u32 (!%p257_p3), %s1405_s24, 4  ;;  %p292_p5 = scmp.lt.s32.totalorder (!%p257_p3), %s1409_s25, 1 }
   0x9   : > { %s1809_s30 = smov (%p31_p4, %s1807_s30), 0  ;;  %260 = sbr.rel (%p257_p3) target bundleno = 713 (0x2c9), region = 48 }
   0xa   : > { %p294_p6 = scmp.lt.s32.totalorder (!%p257_p3), %s1151_s8, 47  ;;  %p1154_p7 = scmp.ne.s32.totalorder (!%p257_p3), %s1405_s24, 0 }
   0xe   : > { %s1811_s25 = smov (!%p292_p5, %s1409_s25), 1  ;;  %s1813_s8 = smov (!%p294_p6, %s1151_s8), 47 }
   0xf   : > { %s1273_s9 = smul.u32 48, %s1811_s25  ;;  %s1153_s10 = sshll.u32 %s1811_s25, 2 }
  0x10   : > { %s1502_s13 = scalar_lea.vmem %s1799_s7, %s1153_s10  ;;  %309 = sbr.rel (%p1154_p7) target bundleno = 23 (0x17), region = 52 }
  0x11   : > { %s297_s14 = sadd.s32 %s1273_s9, %s1813_s8 }
  0x12   : > { %s1152_s15 = sshll.u32 %s297_s14, 2 }
  0x13   : > { %s1507_s18 = scalar_lea.vmem %s1792_s0, %s1152_s15 }
  0x15   : > { %v1423_v0 = vmov 0.0  }
  0x16   : > { %310 = vst [vmem:[#allocation2] sm:$0x1] %v1423_v0 }
  0x17 PF: > { %v1317_v1 = vld [vmem:[%s1793_s1 + $0x38] sm:$0xff]   ;;  %v1318_v2 = vld [vmem:[%s1793_s1 + $0x30] sm:$0xff]   ;;  %v1319_v3 = vld [vmem:[%s1793_s1 + $0x28] sm:$0xff]   ;;  %v599_v17 = vlaneseq  ;;  %s1173_s20 = sshll.u32 %s1405_s24, 7  ;;  %p1174_p8 = scmp.ne.s32.totalorder %s1405_s24, 2 }
  0x18   : > { %1225 = vmatprep.subr.bf16.mxu0 %v1317_v1  ;;  %1257 = vmatprep.subr.bf16.mxu1 %v1317_v1  ;;  %v1320_v4 = vld [vmem:[%s1793_s1 + $0x20] sm:$0xff]   ;;  %v1321_v7 = vld [vmem:[%s1793_s1 + $0x18] sm:$0xff]   ;;  %v1322_v8 = vld [vmem:[%s1793_s1 + $0x10] sm:$0xff]   ;;  %v1547_v20 = vstv %s1173_s20 }
  0x19   : > { %1226 = vmatpush3.bf16.msra.mxu0 %v1317_v1  ;;  %1265 = vmatpush3.bf16.msra.mxu1 %v1317_v1  ;;  %v1325_v5 = vld [vmem:[%s1507_s18] sm:$0xff]   ;;  %v1323_v9 = vld [vmem:[%s1793_s1 + $0x8] sm:$0xff]   ;;  %v1327_v13 = vld [vmem:[%s1507_s18 + $0x10] sm:$0xff]   ;;  %v1543_v18 = vshrl.u32 %v599_v17, 7 }
  0x1a   : > { %1227 = vmatprep.subr.bf16.mxu0 %v1318_v2  ;;  %1258 = vmatprep.subr.bf16.mxu1 %v1318_v2  ;;  %v1328_v6 = vld [vmem:[%s1507_s18 + $0x20] sm:$0xff]   ;;  %v1326_v11 = vld [vmem:[%s1507_s18 + $0x8] sm:$0xff]   ;;  %v1331_v14 = vld [vmem:[%s1507_s18 + $0x30] sm:$0xff]  }
  0x1b   : > { %1241 = vmatprep.mubr.bf16.mxu0 %v1325_v5  ;;  %1249 = vmatprep.mubr.bf16.mxu1 %v1328_v6  ;;  %v1324_v10 = vld [vmem:[%s1793_s1] sm:$0xff]   ;;  %v1330_v12 = vld [vmem:[%s1507_s18 + $0x28] sm:$0xff]   ;;  %v1329_v15 = vld [vmem:[%s1507_s18 + $0x18] sm:$0xff]   ;;  %v602_v19 = vadd.s32 16, %v1543_v18  ;;  %v603_v21 = vadd.s32 24, %v1543_v18  ;;  %v601_v22 = vadd.s32 8, %v1543_v18  ;;  %v617_v28 = vadd.s32 %v1547_v20, %v1543_v18 }
  0x1c   : > { %v1332_v16 = vld [vmem:[%s1507_s18 + $0x38] sm:$0xff]   ;;  %v604_v23 = vadd.s32 32, %v1543_v18  ;;  %v1555_v25 = vld [vmem:[%s1794_s2] ss:$0 sm:$0xff]  ;;  %v606_v35 = vadd.s32 48, %v1543_v18  ;;  %v607_v39 = vadd.s32 56, %v1543_v18 }
  0x1d   : > { %1228 = vmatpush3.bf16.msra.mxu0 %v1318_v2  ;;  %1266 = vmatpush3.bf16.msra.mxu1 %v1318_v2  ;;  %v619_v27 = vadd.s32 %v1547_v20, %v602_v19  ;;  %v1563_v30 = vadd.s32 %v1547_v20, %v603_v21  ;;  %v618_v31 = vadd.s32 %v1547_v20, %v601_v22  ;;  %v1575_v37 = vld [vmem:[%s1795_s3] ss:$0 sm:$0xff]  ;;  %vm633_vm1 = vcmp.lt.s32.totalorder %v617_v28, 324 }
  0x1e   : > { %1229 = vmatprep.subr.bf16.mxu0 %v1319_v3  ;;  %1259 = vmatprep.subr.bf16.mxu1 %v1319_v3  ;;  %v1570_v36 = vadd.s32 %v1547_v20, %v604_v23  ;;  %v610_v44 = vadd.s32 80, %v1543_v18  ;;  %v1587_v48 = vadd.s32 %v1547_v20, %v606_v35  ;;  %v608_v50 = vadd.s32 64, %v1543_v18 }
  0x1f   : > { %vm635_vm0 = vcmp.lt.s32.totalorder %v619_v27, 324  ;;  %vm636_vm3 = vcmp.lt.s32.totalorder %v1563_v30, 324  ;;  %vm634_vm4 = vcmp.lt.s32.totalorder %v618_v31, 324  ;;  %v1592_v51 = vadd.s32 %v1547_v20, %v607_v39 }
  0x20   : > { %vm637_vm5 = vcmp.lt.s32.totalorder %v1570_v36, 324  ;;  %v605_v52 = vadd.s32 40, %v1543_v18  ;;  %v1598_v56 = vadd.s32 %v1547_v20, %v610_v44  ;;  %v611_v58 = vadd.s32 88, %v1543_v18 }
  0x21   : > { %1230 = vmatpush3.bf16.msra.mxu0 %v1319_v3  ;;  %1267 = vmatpush3.bf16.msra.mxu1 %v1319_v3  ;;  %v609_v59 = vadd.s32 72, %v1543_v18  ;;  %vm639_vm9 = vcmp.lt.s32.totalorder %v1587_v48, 324  ;;  %v625_v3 = vadd.s32 %v1547_v20, %v608_v50  ;;  %vm640_vm11 = vcmp.lt.s32.totalorder %v1592_v51, 324 }
  0x22   : > { %1231 = vmatprep.subr.bf16.mxu0 %v1320_v4  ;;  %1260 = vmatprep.subr.bf16.mxu1 %v1320_v4  ;;  %v622_v5 = vadd.s32 %v1547_v20, %v605_v52  ;;  %v612_v44 = vadd.s32 96, %v1543_v18  ;;  %v613_v48 = vadd.s32 104, %v1543_v18 }
  0x23   : > { %v626_v30 = vadd.s32 %v1547_v20, %v609_v59 }
  0x24   : > { %vm638_vm13 = vcmp.lt.s32.totalorder %v622_v5, 324  ;;  %v629_v59 = vadd.s32 %v1547_v20, %v612_v44 }
  0x25   : > { %1232 = vmatpush3.bf16.msra.mxu0 %v1320_v4  ;;  %1268 = vmatpush3.bf16.msra.mxu1 %v1320_v4 }
  0x26   : > { %1233 = vmatprep.subr.bf16.mxu0 %v1321_v7  ;;  %1261 = vmatprep.subr.bf16.mxu1 %v1321_v7 }
  0x29   : > { %1234 = vmatpush3.bf16.msra.mxu0 %v1321_v7  ;;  %1269 = vmatpush3.bf16.msra.mxu1 %v1321_v7 }
  0x2a   : > { %1235 = vmatprep.subr.bf16.mxu0 %v1322_v8  ;;  %1262 = vmatprep.subr.bf16.mxu1 %v1322_v8 }
  0x2d   : > { %1236 = vmatpush3.bf16.msra.mxu0 %v1322_v8  ;;  %1270 = vmatpush3.bf16.msra.mxu1 %v1322_v8 }
  0x2e   : > { %1237 = vmatprep.subr.bf16.mxu0 %v1323_v9  ;;  %1263 = vmatprep.subr.bf16.mxu1 %v1323_v9 }
  0x31   : > { %1238 = vmatpush3.bf16.msra.mxu0 %v1323_v9  ;;  %1271 = vmatpush3.bf16.msra.mxu1 %v1323_v9 }
  0x32   : > { %1239 = vmatprep.subr.bf16.mxu0 %v1324_v10  ;;  %1264 = vmatprep.subr.bf16.mxu1 %v1324_v10 }
  0x35   : > { %1240 = vmatpush3.bf16.msra.mxu0 %v1324_v10  ;;  %1272 = vmatpush3.bf16.msra.mxu1 %v1324_v10 }
  0x38   : > { %1242 = vmatmul.mubr.bf16.vlgmr.msra.gmra.mxu0 %v1326_v11  ;;  %1250 = vmatmul.mubr.bf16.vlgmr.msra.gmra.mxu1 %v1330_v12  ;;  %v1618_v12 = vadd.s32 %v1547_v20, %v611_v58  ;;  %v614_v58 = vadd.s32 112, %v1543_v18 }
  0x39   : > { %1245 = vmatprep.mubr.bf16.mxu0 %v1327_v13  ;;  %1253 = vmatprep.mubr.bf16.mxu1 %v1331_v14 }
  0x40   : > { %1246 = vmatmul.mubr.bf16.gmra.mxu0 %v1329_v15  ;;  %1254 = vmatmul.mubr.bf16.gmra.mxu1 %v1332_v16 }
  0xf8   : > { %v1243_v24 = vpop.f32.mrf.mxu0  ;;  %v1557_v26 = vpop.f32.mrf.mxu1 }
  0xf9   : > { %v489_v33 = vadd.f32 %v1243_v24, %v1555_v25 }
  0xfa   : > { %v480_v29 = vpop.f32.mrf.mxu0  ;;  %v512_v32 = vpop.f32.mrf.mxu1 }
  0xfb   : > { %v481_v34 = vadd.f32 %v1555_v25, %v480_v29  ;;  %v568_v46 = vmul.f32 %v1575_v37, %v489_v33  ;;  %vm545_vm6 = vcmp.gt.f32.partialorder %v489_v33, 0.0  ;;  %v513_v10 = vadd.f32 %v1555_v25, %v512_v32 }
  0xfc   : > { %v1244_v38 = vpop.f32.mrf.mxu0  ;;  %v1578_v40 = vpop.f32.mrf.mxu1  ;;  %v521_v29 = vadd.f32 %v1557_v26, %v1555_v25 }
  0xfd   : > { %v566_v41 = vmul.f32 %v1575_v37, %v481_v34  ;;  %v492_v42 = vadd.f32 %v1244_v38, %v1555_v25  ;;  %vm543_vm2 = vcmp.gt.f32.partialorder %v481_v34, 0.0  ;;  %v584_v61 = vsel %vm545_vm6, %v489_v33, %v568_v46 }
  0xfe   : > { %v483_v43 = vpop.f32.mrf.mxu0  ;;  %v515_v45 = vpop.f32.mrf.mxu1  ;;  %v651_v9 = vsel %vm635_vm0, %v584_v61, 0.0  ;;  %v574_v35 = vmul.f32 %v1575_v37, %v513_v10  ;;  %vm643_vm0 = vcmp.lt.s32.totalorder %v1598_v56, 324  ;;  %v524_v26 = vadd.f32 %v1578_v40, %v1555_v25 }
  0xff   : > { %v484_v47 = vadd.f32 %v1555_v25, %v483_v43  ;;  %v582_v53 = vsel %vm543_vm2, %v481_v34, %v566_v41  ;;  %v569_v54 = vmul.f32 %v1575_v37, %v492_v42  ;;  %vm546_vm8 = vcmp.gt.f32.partialorder %v492_v42, 0.0 }
 0x100   : > { %v1247_v49 = vpop.f32.mrf.mxu0  ;;  %v1602_v60 = vpop.f32.mrf.mxu1  ;;  %v649_v1 = vsel %vm633_vm1, %v582_v53, 0.0  ;;  %v516_v23 = vadd.f32 %v1555_v25, %v515_v45  ;;  %vm551_vm1 = vcmp.gt.f32.partialorder %v513_v10, 0.0  ;;  %vm641_vm2 = vcmp.lt.s32.totalorder %v625_v3, 324 }
 0x101   : > { %vm544_vm7 = vcmp.gt.f32.partialorder %v484_v47, 0.0  ;;  %v567_v55 = vmul.f32 %v1575_v37, %v484_v47  ;;  %v505_v63 = vadd.f32 %v1247_v49, %v1555_v25  ;;  %v585_v6 = vsel %vm546_vm8, %v492_v42, %v569_v54 }
 0x102   : > { %v496_v57 = vpop.f32.mrf.mxu0  ;;  %v528_v14 = vpop.f32.mrf.mxu1  ;;  %v652_v22 = vsel %vm636_vm3, %v585_v6, 0.0  ;;  %v575_v42 = vmul.f32 %v1575_v37, %v516_v23  ;;  %vm644_vm3 = vcmp.lt.s32.totalorder %v1618_v12, 324  ;;  %v576_v46 = vmul.f32 %v1575_v37, %v521_v29 }
 0x103   : > { %v583_v62 = vsel %vm544_vm7, %v484_v47, %v567_v55  ;;  %v497_v0 = vadd.f32 %v1555_v25, %v496_v57  ;;  %v572_v16 = vmul.f32 %v1575_v37, %v505_v63  ;;  %vm549_vm12 = vcmp.gt.f32.partialorder %v505_v63, 0.0 }
 0x104   : > { %v650_v2 = vsel %vm634_vm4, %v583_v62, 0.0  ;;  %v1248_v4 = vpop.f32.mrf.mxu0  ;;  %v1256_v32 = vpop.f32.mrf.mxu1  ;;  %vm552_vm4 = vcmp.gt.f32.partialorder %v516_v23, 0.0  ;;  %v590_v47 = vsel %vm551_vm1, %v513_v10, %v574_v35  ;;  %v529_v50 = vadd.f32 %v1555_v25, %v528_v14 }
 0x105   : > { %v666_v7 = vadd.f32 %v650_v2, %v649_v1  ;;  %vm547_vm10 = vcmp.gt.f32.partialorder %v497_v0, 0.0  ;;  %v570_v8 = vmul.f32 %v1575_v37, %v497_v0  ;;  %v508_v11 = vadd.f32 %v1248_v4, %v1555_v25 }
 0x106   : > { %v499_v13 = vpop.f32.mrf.mxu0  ;;  %v588_v33 = vsel %vm549_vm12, %v505_v63, %v572_v16  ;;  %v531_v45 = vpop.f32.mrf.mxu1  ;;  %vm642_vm6 = vcmp.lt.s32.totalorder %v626_v30, 324  ;;  %v577_v52 = vmul.f32 %v1575_v37, %v524_v26  ;;  %v591_v53 = vsel %vm552_vm4, %v516_v23, %v575_v42 }
 0x107   : > { %v667_v15 = vadd.f32 %v666_v7, %v651_v9  ;;  %v586_v19 = vsel %vm547_vm10, %v497_v0, %v570_v8  ;;  %v500_v21 = vadd.f32 %v1555_v25, %v499_v13  ;;  %v573_v27 = vmul.f32 %v1575_v37, %v508_v11 }
 0x108   : > { %v653_v31 = vsel %vm637_vm5, %v586_v19, 0.0  ;;  %vm550_vm15 = vcmp.gt.f32.partialorder %v508_v11, 0.0  ;;  %v655_v43 = vsel %vm639_vm9, %v588_v33, 0.0  ;;  %vm553_vm5 = vcmp.gt.f32.partialorder %v521_v29, 0.0 }
 0x109   : > { %v668_v24 = vadd.f32 %v667_v15, %v652_v22  ;;  %vm548_vm14 = vcmp.gt.f32.partialorder %v500_v21, 0.0  ;;  %v571_v28 = vmul.f32 %v1575_v37, %v500_v21  ;;  %v589_v41 = vsel %vm550_vm15, %v508_v11, %v573_v27 }
 0x10a   : > { %v656_v40 = vsel %vm640_vm11, %v589_v41, 0.0  ;;  %v532_v55 = vadd.f32 %v1555_v25, %v531_v45  ;;  %v657_v57 = vsel %vm641_vm2, %v590_v47, 0.0  ;;  %vm554_vm7 = vcmp.gt.f32.partialorder %v524_v26, 0.0 }
 0x10b   : > { %v669_v34 = vadd.f32 %v668_v24, %v653_v31  ;;  %v587_v38 = vsel %vm548_vm14, %v500_v21, %v571_v28  ;;  %v592_v61 = vsel %vm553_vm5, %v521_v29, %v576_v46  ;;  %v537_v51 = vadd.f32 %v1602_v60, %v1555_v25 }
 0x10c   : > { %v654_v39 = vsel %vm638_vm13, %v587_v38, 0.0  ;;  %v578_v63 = vmul.f32 %v1575_v37, %v529_v50  ;;  %v658_v0 = vsel %vm642_vm6, %v591_v53, 0.0  ;;  %vm555_vm8 = vcmp.gt.f32.partialorder %v529_v50, 0.0 }
 0x10d   : > { %v670_v36 = vadd.f32 %v669_v34, %v654_v39  ;;  %v615_v1 = vadd.s32 120, %v1543_v18  ;;  %v630_v2 = vadd.s32 %v1547_v20, %v613_v48  ;;  %v593_v3 = vsel %vm554_vm7, %v524_v26, %v577_v52 }
 0x10e   : > { %v540_v5 = vadd.f32 %v1256_v32, %v1555_v25  ;;  %v579_v6 = vmul.f32 %v1575_v37, %v532_v55  ;;  %v659_v7 = vsel %vm643_vm0, %v592_v61, 0.0  ;;  %v631_v8 = vadd.s32 %v1547_v20, %v614_v58  ;;  %v665_v32 = vld [vmem:[#allocation2] sm:$0x1] }
 0x10f   : > { %v671_v49 = vadd.f32 %v670_v36, %v655_v43  ;;  %vm556_vm9 = vcmp.gt.f32.partialorder %v532_v55, 0.0  ;;  %v580_v9 = vmul.f32 %v1575_v37, %v537_v51  ;;  %v594_v10 = vsel %vm555_vm8, %v529_v50, %v578_v63 }
 0x110   : > { %vm645_vm10 = vcmp.lt.s32.totalorder %v629_v59, 324  ;;  %v660_v11 = vsel %vm644_vm3, %v593_v3, 0.0  ;;  %vm557_vm11 = vcmp.gt.f32.partialorder %v537_v51, 0.0  ;;  %v632_v13 = vadd.s32 %v1547_v20, %v615_v1 }
 0x111   : > { %v672_v54 = vadd.f32 %v671_v49, %v656_v40  ;;  %v581_v14 = vmul.f32 %v1575_v37, %v540_v5  ;;  %v595_v15 = vsel %vm556_vm9, %v532_v55, %v579_v6  ;;  %vm646_vm12 = vcmp.lt.s32.totalorder %v630_v2, 324 }
 0x112   : > { %v661_v56 = vsel %vm645_vm10, %v594_v10, 0.0  ;;  %vm558_vm13 = vcmp.gt.f32.partialorder %v540_v5, 0.0  ;;  %v596_v16 = vsel %vm557_vm11, %v537_v51, %v580_v9  ;;  %vm647_vm14 = vcmp.lt.s32.totalorder %v631_v8, 324 }
 0x113   : > { %v673_v62 = vadd.f32 %v672_v54, %v657_v57  ;;  %v662_v21 = vsel %vm646_vm12, %v595_v15, 0.0  ;;  %v597_v22 = vsel %vm558_vm13, %v540_v5, %v581_v14  ;;  %vm648_vm15 = vcmp.lt.s32.totalorder %v632_v13, 324 }
 0x114   : > { %v663_v24 = vsel %vm647_vm14, %v596_v16, 0.0  ;;  %v664_v27 = vsel %vm648_vm15, %v597_v22, 0.0 }
 0x115   : > { %v674_v4 = vadd.f32 %v673_v62, %v658_v0 }
 0x117   : > { %v675_v60 = vadd.f32 %v674_v4, %v659_v7 }
 0x119   : > { %v676_v25 = vadd.f32 %v675_v60, %v660_v11 }
 0x11b   : > { %v677_v19 = vadd.f32 %v676_v25, %v661_v56 }
 0x11d   : > { %v678_v23 = vadd.f32 %v677_v19, %v662_v21 }
 0x11f   : > { %v679_v12 = vadd.f32 %v678_v23, %v663_v24 }
 0x121   : > { %v680_v28 = vadd.f32 %v679_v12, %v664_v27 }
 0x123   : > { %v681_v29 = vrot.slane %v680_v28, 4 }
 0x125   : > { %v682_v20 = vadd.f32 %v681_v29, %v680_v28 }
 0x127   : > { %v683_v31 = vrot.slane %v682_v20, 2 }
 0x129   : > { %v684_v30 = vadd.f32 %v683_v31, %v682_v20 }
 0x12b   : > { %v685_v37 = vrot.slane %v684_v30, 1 }
 0x12d   : > { %v686_v33 = vadd.f32 %v685_v37, %v684_v30  ;;  %692 = sbr.rel (%p1174_p8) target bundleno = 713 (0x2c9), region = 56 }
 0x12f   : > { %v687_v34 = vadd.f32 %v686_v33, %v665_v32 }
 0x131   : > { %688 = vst [vmem:[#allocation2] sm:$0x1] %v687_v34 }
 0x132   : > { %v1333_v35 = vld [vmem:[%s1796_s4 + $0xe4] ss:$16 sps:$4 sm:$0xff]   ;;  %v1335_v38 = vld [vmem:[%s1796_s4 + $0xec] ss:$16 sps:$4 sm:$0xff]   ;;  %v1424_v39 = vmov 0   ;;  %v974_v60 = vsub.s32 0, %v1543_v18 }
 0x133   : > { %920 = vmatprep.mubr.bf16.mxu0 %v1424_v39  ;;  %961 = vmatprep.mubr.bf16.mxu1 %v1424_v39  ;;  %v1337_v41 = vld [vmem:[%s1796_s4 + $0xe0] ss:$16 sps:$4 sm:$0xff]   ;;  %v1338_v26 = vld [vmem:[%s1796_s4 + $0xe8] ss:$16 sps:$4 sm:$0xff]   ;;  %v1339_v36 = vld [vmem:[%s1796_s4 + $0xc4] ss:$16 sps:$4 sm:$0xff]  }
 0x134   : > { %888 = vmatprep.subr.bf16.mxu0 %v1333_v35  ;;  %929 = vmatprep.subr.bf16.mxu1 %v1335_v38  ;;  %v1341_v42 = vld [vmem:[%s1796_s4 + $0xcc] ss:$16 sps:$4 sm:$0xff]   ;;  %v1343_v43 = vld [vmem:[%s1796_s4 + $0xc0] ss:$16 sps:$4 sm:$0xff]   ;;  %v1344_v44 = vld [vmem:[%s1796_s4 + $0xc8] ss:$16 sps:$4 sm:$0xff]  }
 0x135   : > { %889 = vmatpush1.bf16.msra.mxu0 %v1337_v41  ;;  %930 = vmatpush1.bf16.msra.mxu1 %v1338_v26  ;;  %v1345_v45 = vld [vmem:[%s1796_s4 + $0xa4] ss:$16 sps:$4 sm:$0xff]   ;;  %v1347_v46 = vld [vmem:[%s1796_s4 + $0xac] ss:$16 sps:$4 sm:$0xff]   ;;  %v1349_v47 = vld [vmem:[%s1796_s4 + $0xa0] ss:$16 sps:$4 sm:$0xff]  }
 0x136   : > { %890 = vmatprep.subr.bf16.mxu0 %v1339_v36  ;;  %931 = vmatprep.subr.bf16.mxu1 %v1341_v42  ;;  %v1350_v49 = vld [vmem:[%s1796_s4 + $0xa8] ss:$16 sps:$4 sm:$0xff]   ;;  %v1351_v50 = vld [vmem:[%s1796_s4 + $0x84] ss:$16 sps:$4 sm:$0xff]   ;;  %v1353_v40 = vld [vmem:[%s1796_s4 + $0x8c] ss:$16 sps:$4 sm:$0xff]  }
 0x137   : > { %v1355_v48 = vld [vmem:[%s1796_s4 + $0x80] ss:$16 sps:$4 sm:$0xff]   ;;  %v1356_v52 = vld [vmem:[%s1796_s4 + $0x88] ss:$16 sps:$4 sm:$0xff]   ;;  %v1357_v53 = vld [vmem:[%s1796_s4 + $0x64] ss:$16 sps:$4 sm:$0xff]  }
 0x138   : > { %v1359_v54 = vld [vmem:[%s1796_s4 + $0x6c] ss:$16 sps:$4 sm:$0xff]   ;;  %v1361_v55 = vld [vmem:[%s1796_s4 + $0x60] ss:$16 sps:$4 sm:$0xff]   ;;  %v1362_v57 = vld [vmem:[%s1796_s4 + $0x68] ss:$16 sps:$4 sm:$0xff]  }
 0x139   : > { %891 = vmatpush1.bf16.msra.mxu0 %v1343_v43  ;;  %932 = vmatpush1.bf16.msra.mxu1 %v1344_v44  ;;  %v1363_v58 = vld [vmem:[%s1796_s4 + $0x44] ss:$16 sps:$4 sm:$0xff]   ;;  %v1365_v59 = vld [vmem:[%s1796_s4 + $0x4c] ss:$16 sps:$4 sm:$0xff]   ;;  %v1367_v61 = vld [vmem:[%s1796_s4 + $0x40] ss:$16 sps:$4 sm:$0xff]  }
 0x13a   : > { %892 = vmatprep.subr.bf16.mxu0 %v1345_v45  ;;  %933 = vmatprep.subr.bf16.mxu1 %v1347_v46  ;;  %v1368_v62 = vld [vmem:[%s1796_s4 + $0x48] ss:$16 sps:$4 sm:$0xff]   ;;  %v1369_v51 = vld [vmem:[%s1796_s4 + $0x24] ss:$16 sps:$4 sm:$0xff]   ;;  %v1371_v63 = vld [vmem:[%s1796_s4 + $0x2c] ss:$16 sps:$4 sm:$0xff]  }
 0x13b   : > { %v1373_v0 = vld [vmem:[%s1796_s4 + $0x20] ss:$16 sps:$4 sm:$0xff]   ;;  %v1374_v1 = vld [vmem:[%s1796_s4 + $0x28] ss:$16 sps:$4 sm:$0xff]   ;;  %v1375_v3 = vld [vmem:[%s1796_s4 + $0x4] ss:$16 sps:$4 sm:$0xff]  }
 0x13c   : > { %v693_v2 = vld [vmem:[#allocation2] sm:$0x1]  ;;  %v1377_v4 = vld [vmem:[%s1796_s4 + $0xc] ss:$16 sps:$4 sm:$0xff]   ;;  %v1380_v7 = vld [vmem:[%s1796_s4 + $0x8] ss:$16 sps:$4 sm:$0xff]  }
 0x13d   : > { %893 = vmatpush1.bf16.msra.mxu0 %v1349_v47  ;;  %934 = vmatpush1.bf16.msra.mxu1 %v1350_v49  ;;  %v694_v5 = vmul.f32 0.0030864198, %v693_v2  ;;  %v1379_v6 = vld [vmem:[%s1796_s4] ss:$16 sps:$4 sm:$0xff]   ;;  %v982_v9 = vsub.s32 2, %v1543_v18  ;;  %v978_v11 = vsub.s32 1, %v1543_v18 }
 0x13e   : > { %894 = vmatprep.subr.bf16.mxu0 %v1351_v50  ;;  %935 = vmatprep.subr.bf16.mxu1 %v1353_v40  ;;  %v970_v10 = vld [vmem:[%s1797_s5] sm:$0xf]  ;;  %v986_v13 = vsub.s32 3, %v1543_v18  ;;  %vm1026_vm0 = vcmask 1040384   ;;  %vm1073_vm1 = vcmp.lt.s32.totalorder %v599_v17, 512 }
 0x13f   : > { %v695_v8 = vpack.c.bf16 %v694_v5, %v694_v5  ;;  %v996_v25 = vld [vmem:[%s1798_s6] sm:$0xf]  ;;  %v975_v14 = vrot.slane %v970_v10, %v974_v60  ;;  %v983_v15 = vrot.slane %v970_v10, %v982_v9  ;;  %v979_v19 = vrot.slane %v970_v10, %v978_v11 }
 0x140   : > { %v1001_v56 = vrot.slane %v996_v25, %v974_v60  ;;  %v1009_v16 = vrot.slane %v996_v25, %v982_v9  ;;  %v987_v21 = vrot.slane %v970_v10, %v986_v13  ;;  %v1005_v27 = vrot.slane %v996_v25, %v978_v11 }
 0x141   : > { %895 = vmatpush1.bf16.msra.mxu0 %v1355_v48  ;;  %936 = vmatpush1.bf16.msra.mxu1 %v1356_v52  ;;  %v1013_v28 = vrot.slane %v996_v25, %v986_v13 }
 0x142   : > { %896 = vmatprep.subr.bf16.mxu0 %v1357_v53  ;;  %937 = vmatprep.subr.bf16.mxu1 %v1359_v54  ;;  %v1425_v53 = vmov 1966171168  }
 0x143   : > { %v1049_v54 = vunpack.c.l.s4 %v1425_v53 }
 0x145   : > { %897 = vmatpush1.bf16.msra.mxu0 %v1361_v55  ;;  %938 = vmatpush1.bf16.msra.mxu1 %v1362_v57  ;;  %v1050_v55 = vunpack.c.0.s8 %v1049_v54 }
 0x146   : > { %898 = vmatprep.subr.bf16.mxu0 %v1363_v58  ;;  %939 = vmatprep.subr.bf16.mxu1 %v1365_v59 }
 0x147   : > { %v1053_v58 = vsub.s32 %v1050_v55, %v1543_v18 }
 0x149   : > { %899 = vmatpush1.bf16.msra.mxu0 %v1367_v61  ;;  %940 = vmatpush1.bf16.msra.mxu1 %v1368_v62 }
 0x14a   : > { %900 = vmatprep.subr.bf16.mxu0 %v1369_v51  ;;  %941 = vmatprep.subr.bf16.mxu1 %v1371_v63 }
 0x14d   : > { %901 = vmatpush1.bf16.msra.mxu0 %v1373_v0  ;;  %942 = vmatpush1.bf16.msra.mxu1 %v1374_v1 }
 0x14e   : > { %902 = vmatprep.subr.bf16.mxu0 %v1375_v3  ;;  %943 = vmatprep.subr.bf16.mxu1 %v1377_v4 }
 0x151   : > { %903 = vmatpush1.bf16.msra.mxu0 %v1379_v6  ;;  %944 = vmatpush1.bf16.msra.mxu1 %v1380_v7 }
 0x154   : > { %921 = vmatmul.mubr.bf16.vlgmr.msra.gmra.mxu0 %v695_v8  ;;  %962 = vmatmul.mubr.bf16.vlgmr.msra.gmra.mxu1 %v695_v8 }
 0x214   : > { %v922_v22 = vpop.f32.mrf.mxu0  ;;  %v963_v23 = vpop.f32.mrf.mxu1 }
 0x215   : > { %v992_v24 = vmul.f32 %v975_v14, %v922_v22  ;;  %v994_v12 = vmul.f32 %v983_v15, %v963_v23 }
 0x216   : > { %v924_v29 = vpop.f32.mrf.mxu0  ;;  %v965_v20 = vpop.f32.mrf.mxu1 }
 0x217   : > { %v1018_v31 = vadd.f32 %v1001_v56, %v992_v24  ;;  %v1020_v30 = vadd.f32 %v1009_v16, %v994_v12  ;;  %v993_v37 = vmul.f32 %v979_v19, %v924_v29  ;;  %v995_v32 = vmul.f32 %v987_v21, %v965_v20 }
 0x218   : > { %v926_v33 = vpop.f32.mrf.mxu0  ;;  %v967_v34 = vpop.f32.mrf.mxu1 }
 0x219   : > { %v1022_v35 = vmul.f32 %v1018_v31, %v1018_v31  ;;  %v1024_v38 = vmul.f32 %v1020_v30, %v1020_v30  ;;  %v1019_v39 = vadd.f32 %v1005_v27, %v993_v37  ;;  %v1021_v41 = vadd.f32 %v1013_v28, %v995_v32 }
 0x21a   : > { %v927_v26 = vpop.f32.mrf.mxu0  ;;  %v968_v36 = vpop.f32.mrf.mxu1 }
 0x21b   : > { %v1023_v42 = vmul.f32 %v1019_v39, %v1019_v39  ;;  %v1025_v43 = vmul.f32 %v1021_v41, %v1021_v41  ;;  %v1027_v44 = vsel %vm1026_vm0, %v1022_v35, 0.0  ;;  %v1030_v46 = vsel %vm1026_vm0, %v1024_v38, 0.0 }
 0x21d   : > { %v1028_v45 = vsel %vm1026_vm0, %v1023_v42, 0.0  ;;  %v1032_v50 = vsel %vm1026_vm0, %v1025_v43, 0.0 }
 0x21e   : > { %v1029_v47 = vadd.f32 %v1028_v45, %v1027_v44 }
 0x220   : > { %v1031_v49 = vadd.f32 %v1030_v46, %v1029_v47 }
 0x222   : > { %v1033_v40 = vadd.f32 %v1032_v50, %v1031_v49 }
 0x224   : > { %1034 = vadd.xlane.f32.xlu0 %v1033_v40 }
 0x2ad   : > { %v1035_v48 = vpop.xlane.xlu0 %1034 }
 0x2ae   : > { %v1036_v52 = vadd.f32 1e-12, %v1035_v48 }
 0x2b0   : > { %1381 = vrsqrt.f32 %v1036_v52 }
 0x2bd   : > { %v1382_v57 = vpop.eup %1381 }
 0x2be   : > { %v1038_v59 = vmul.f32 %v1382_v57, %v1018_v31  ;;  %v1039_v61 = vmul.f32 %v1382_v57, %v1019_v39  ;;  %v1040_v62 = vmul.f32 %v1382_v57, %v1020_v30  ;;  %v1041_v51 = vmul.f32 %v1382_v57, %v1021_v41 }
 0x2c0   : > { %v1046_v63 = vcombine.low %v1038_v59, %v1039_v61  ;;  %v1047_v0 = vcombine.low %v1040_v62, %v1041_v51 }
 0x2c2   : > { %v1054_v1 = vrot.slane %v1046_v63, %v1053_v58  ;;  %v1061_v2 = vrot.slane %v1047_v0, %v1053_v58 }
 0x2c4   : > { %v1062_v3 = vcombine.low %v1054_v1, %v1061_v2 }
 0x2c6   : > { %v1069_v4 = vrot.slane %v1062_v3, %v1053_v58 }
 0x2c8   : > { %1075 = vst.msk [vmem:[%s1502_s13] sm:$0xf] %vm1073_vm1, %v1069_v4 }
 0x2c9 PF: > { %s17_s28 = sadd.s32 1, %s1421_s28   ;;  %s1800_s24 = smov %s1413_s26 }
 0x2ca   : > { %p14_p9 = scmp.ge.s32.totalorder %s17_s28, 8   ;;  %s1801_s25 = smov %s1417_s27 }
 0x2cb   : > { %s1802_s26 = smov %s1805_s29  ;;  %s1803_s27 = smov %s1809_s30 }
 0x2cc   :  { %16 = sbr.rel (!%p14_p9) target bundleno = 3 (0x3), region = 86 }

// kernel: insightface_forward_train.3
= control target key start
LH: loop header
LB: loop body
LE: loop exit
PB: predicated region body
PF: predicated region fallthrough
CT: control target
= control target key end

     0   :  { %s2105_s15 = smov 0   ;;  %s2107_s16 = smov 0   ;;  %s2673_s0 = inlined_call_operand.vmem [shape: f32[2,512], index: 0, kind: input, shape index: {}]   ;;  %s2674_s1 = inlined_call_operand.vmem [shape: s32[2,1], index: 1, kind: input, shape index: {}]   ;;  %s2675_s2 = inlined_call_operand.vmem [shape: bf16[512,1536], index: 2, kind: input, shape index: {}]   ;;  %s2676_s3 = inlined_call_operand.vmem [shape: f32[1,1536], index: 3, kind: input, shape index: {}]   ;;  %s2677_s4 = inlined_call_operand.vmem [shape: f32[1,128], index: 4, kind: output, shape index: {}]  }
   0x1   :  { %s2109_s17 = smov 0  }
   0x2 LB: > { %s2121_s18 = sadd.s32 4294967295, %s2074_s17   ;;  %s2124_s19 = sadd.s32 1, %s2074_s17   ;;  %s2074_s17 = sphi %s2109_s17, %s2680_s17   ;;  %s2070_s16 = sphi %s2107_s16, %s2679_s16   ;;  %s2066_s15 = sphi %s2105_s15, %s2678_s15  }
   0x3   : > { %s60_s20 = ssub.s32 %s2074_s17, %s2124_s19  ;;  %s63_s21 = sadd.s32 1, %s2070_s16 }
   0x4   : > { %p61_p0 = scmp.eq.s32.totalorder %s60_s20, 0  ;;  %p70_p1 = scmp.ne.s32.totalorder %s2070_s16, %s2066_s15 }
   0x5   : > { %p71_p2 = scmp.eq.s32.totalorder %s2074_s17, 0  ;;  %p1666_p4 = scmp.ge.s32.totalorder %s2074_s17, 3 }
   0x6   : > { %s2133_s22 = scalar_select %p61_p0, %s2070_s16, %s63_s21  }
   0x7   : > { %p72_p3 = por %p71_p2, %p70_p1  ;;  %149 = sbr.rel (%p1666_p4) target bundleno = 80 (0x50), region = 24 }
   0xc   : > { %152 = sbr.rel (!%p72_p3) target bundleno = 80 (0x50), region = 28  ;;  %s154_s23 = sand.u32 (%p72_p3), 1, %s2070_s16  }
   0xd   : > { %s1812_s24 = sshll.u32 (%p72_p3), %s2074_s17, 4  ;;  %s1667_s25 = sshll.u32 (%p72_p3), %s154_s23, 10 }
   0xe   : > { %s2141_s28 = scalar_lea.vmem (%p72_p3), %s2675_s2, %s1812_s24  ;;  %s2146_s29 = scalar_lea.vmem (%p72_p3), [#allocation5], %s1667_s25 }
   0xf   : > { %v172_v0 = vld [vmem:[%s2141_s28] sm:$0xff] (%p72_p3)  ;;  %v174_v1 = vld [vmem:[%s2141_s28 + $0x8] sm:$0xff] (%p72_p3)  ;;  %v176_v2 = vld [vmem:[%s2141_s28 + $0x30] sm:$0xff] (%p72_p3) }
  0x10   : > { %173 = vst [vmem:[%s2146_s29] sm:$0xff] (%p72_p3), %v172_v0  ;;  %175 = vst [vmem:[%s2146_s29 + $0x8] sm:$0xff] (%p72_p3), %v174_v1  ;;  %v178_v3 = vld [vmem:[%s2141_s28 + $0x38] sm:$0xff] (%p72_p3)  ;;  %v180_v4 = vld [vmem:[%s2141_s28 + $0x60] sm:$0xff] (%p72_p3) }
  0x11   : > { %177 = vst [vmem:[%s2146_s29 + $0x10] sm:$0xff] %v176_v2  ;;  %v182_v5 = vld [vmem:[%s2141_s28 + $0x68] sm:$0xff]  ;;  %179 = vst [vmem:[%s2146_s29 + $0x18] sm:$0xff] %v178_v3  ;;  %v184_v6 = vld [vmem:[%s2141_s28 + $0x90] sm:$0xff] }
  0x12   : > { %181 = vst [vmem:[%s2146_s29 + $0x20] sm:$0xff] %v180_v4  ;;  %183 = vst [vmem:[%s2146_s29 + $0x28] sm:$0xff] %v182_v5  ;;  %v186_v7 = vld [vmem:[%s2141_s28 + $0x98] sm:$0xff]  ;;  %v188_v8 = vld [vmem:[%s2141_s28 + $0xc0] sm:$0xff] }
  0x13   : > { %185 = vst [vmem:[%s2146_s29 + $0x30] sm:$0xff] %v184_v6  ;;  %187 = vst [vmem:[%s2146_s29 + $0x38] sm:$0xff] %v186_v7  ;;  %v190_v9 = vld [vmem:[%s2141_s28 + $0xc8] sm:$0xff]  ;;  %v192_v10 = vld [vmem:[%s2141_s28 + $0xf0] sm:$0xff] }
  0x14   : > { %189 = vst [vmem:[%s2146_s29 + $0x40] sm:$0xff] %v188_v8  ;;  %v194_v11 = vld [vmem:[%s2141_s28 + $0xf8] sm:$0xff]  ;;  %191 = vst [vmem:[%s2146_s29 + $0x48] sm:$0xff] %v190_v9  ;;  %v196_v12 = vld [vmem:[%s2141_s28 + $0x120] sm:$0xff] }
  0x15   : > { %193 = vst [vmem:[%s2146_s29 + $0x50] sm:$0xff] %v192_v10  ;;  %195 = vst [vmem:[%s2146_s29 + $0x58] sm:$0xff] %v194_v11  ;;  %v198_v13 = vld [vmem:[%s2141_s28 + $0x128] sm:$0xff]  ;;  %v200_v14 = vld [vmem:[%s2141_s28 + $0x150] sm:$0xff] }
  0x16   : > { %197 = vst [vmem:[%s2146_s29 + $0x60] sm:$0xff] %v196_v12  ;;  %199 = vst [vmem:[%s2146_s29 + $0x68] sm:$0xff] %v198_v13  ;;  %v202_v15 = vld [vmem:[%s2141_s28 + $0x158] sm:$0xff]  ;;  %v204_v16 = vld [vmem:[%s2141_s28 + $0x180] sm:$0xff] }
  0x17   : > { %201 = vst [vmem:[%s2146_s29 + $0x70] sm:$0xff] %v200_v14  ;;  %v206_v17 = vld [vmem:[%s2141_s28 + $0x188] sm:$0xff]  ;;  %203 = vst [vmem:[%s2146_s29 + $0x78] sm:$0xff] %v202_v15  ;;  %v208_v18 = vld [vmem:[%s2141_s28 + $0x1b0] sm:$0xff] }
  0x18   : > { %205 = vst [vmem:[%s2146_s29 + $0x80] sm:$0xff] %v204_v16  ;;  %207 = vst [vmem:[%s2146_s29 + $0x88] sm:$0xff] %v206_v17  ;;  %v210_v19 = vld [vmem:[%s2141_s28 + $0x1b8] sm:$0xff]  ;;  %v212_v20 = vld [vmem:[%s2141_s28 + $0x1e0] sm:$0xff] }
  0x19   : > { %209 = vst [vmem:[%s2146_s29 + $0x90] sm:$0xff] %v208_v18  ;;  %211 = vst [vmem:[%s2146_s29 + $0x98] sm:$0xff] %v210_v19  ;;  %v214_v21 = vld [vmem:[%s2141_s28 + $0x1e8] sm:$0xff]  ;;  %v216_v22 = vld [vmem:[%s2141_s28 + $0x210] sm:$0xff] }
  0x1a   : > { %213 = vst [vmem:[%s2146_s29 + $0xa0] sm:$0xff] %v212_v20  ;;  %v218_v23 = vld [vmem:[%s2141_s28 + $0x218] sm:$0xff]  ;;  %215 = vst [vmem:[%s2146_s29 + $0xa8] sm:$0xff] %v214_v21  ;;  %v220_v24 = vld [vmem:[%s2141_s28 + $0x240] sm:$0xff] }
  0x1b   : > { %217 = vst [vmem:[%s2146_s29 + $0xb0] sm:$0xff] %v216_v22  ;;  %219 = vst [vmem:[%s2146_s29 + $0xb8] sm:$0xff] %v218_v23  ;;  %v222_v25 = vld [vmem:[%s2141_s28 + $0x248] sm:$0xff]  ;;  %v224_v26 = vld [vmem:[%s2141_s28 + $0x270] sm:$0xff] }
  0x1c   : > { %221 = vst [vmem:[%s2146_s29 + $0xc0] sm:$0xff] %v220_v24  ;;  %223 = vst [vmem:[%s2146_s29 + $0xc8] sm:$0xff] %v222_v25  ;;  %v226_v27 = vld [vmem:[%s2141_s28 + $0x278] sm:$0xff]  ;;  %v228_v28 = vld [vmem:[%s2141_s28 + $0x2a0] sm:$0xff] }
  0x1d   : > { %225 = vst [vmem:[%s2146_s29 + $0xd0] sm:$0xff] %v224_v26  ;;  %v230_v29 = vld [vmem:[%s2141_s28 + $0x2a8] sm:$0xff]  ;;  %227 = vst [vmem:[%s2146_s29 + $0xd8] sm:$0xff] %v226_v27  ;;  %v232_v30 = vld [vmem:[%s2141_s28 + $0x2d0] sm:$0xff] }
  0x1e   : > { %229 = vst [vmem:[%s2146_s29 + $0xe0] sm:$0xff] %v228_v28  ;;  %231 = vst [vmem:[%s2146_s29 + $0xe8] sm:$0xff] %v230_v29  ;;  %v234_v31 = vld [vmem:[%s2141_s28 + $0x2d8] sm:$0xff]  ;;  %v236_v32 = vld [vmem:[%s2141_s28 + $0x300] sm:$0xff] }
  0x1f   : > { %233 = vst [vmem:[%s2146_s29 + $0xf0] sm:$0xff] %v232_v30  ;;  %235 = vst [vmem:[%s2146_s29 + $0xf8] sm:$0xff] %v234_v31  ;;  %v238_v33 = vld [vmem:[%s2141_s28 + $0x308] sm:$0xff]  ;;  %v240_v34 = vld [vmem:[%s2141_s28 + $0x330] sm:$0xff] }
  0x20   : > { %237 = vst [vmem:[%s2146_s29 + $0x100] sm:$0xff] %v236_v32  ;;  %v242_v35 = vld [vmem:[%s2141_s28 + $0x338] sm:$0xff]  ;;  %239 = vst [vmem:[%s2146_s29 + $0x108] sm:$0xff] %v238_v33  ;;  %v244_v36 = vld [vmem:[%s2141_s28 + $0x360] sm:$0xff] }
  0x21   : > { %241 = vst [vmem:[%s2146_s29 + $0x110] sm:$0xff] %v240_v34  ;;  %243 = vst [vmem:[%s2146_s29 + $0x118] sm:$0xff] %v242_v35  ;;  %v246_v37 = vld [vmem:[%s2141_s28 + $0x368] sm:$0xff]  ;;  %v248_v38 = vld [vmem:[%s2141_s28 + $0x390] sm:$0xff] }
  0x22   : > { %245 = vst [vmem:[%s2146_s29 + $0x120] sm:$0xff] %v244_v36  ;;  %247 = vst [vmem:[%s2146_s29 + $0x128] sm:$0xff] %v246_v37  ;;  %v250_v39 = vld [vmem:[%s2141_s28 + $0x398] sm:$0xff]  ;;  %v252_v40 = vld [vmem:[%s2141_s28 + $0x3c0] sm:$0xff] }
  0x23   : > { %249 = vst [vmem:[%s2146_s29 + $0x130] sm:$0xff] %v248_v38  ;;  %v254_v41 = vld [vmem:[%s2141_s28 + $0x3c8] sm:$0xff]  ;;  %251 = vst [vmem:[%s2146_s29 + $0x138] sm:$0xff] %v250_v39  ;;  %v256_v42 = vld [vmem:[%s2141_s28 + $0x3f0] sm:$0xff] }
  0x24   : > { %253 = vst [vmem:[%s2146_s29 + $0x140] sm:$0xff] %v252_v40  ;;  %255 = vst [vmem:[%s2146_s29 + $0x148] sm:$0xff] %v254_v41  ;;  %v258_v43 = vld [vmem:[%s2141_s28 + $0x3f8] sm:$0xff]  ;;  %v260_v44 = vld [vmem:[%s2141_s28 + $0x420] sm:$0xff] }
  0x25   : > { %257 = vst [vmem:[%s2146_s29 + $0x150] sm:$0xff] %v256_v42  ;;  %259 = vst [vmem:[%s2146_s29 + $0x158] sm:$0xff] %v258_v43  ;;  %v262_v45 = vld [vmem:[%s2141_s28 + $0x428] sm:$0xff]  ;;  %v264_v46 = vld [vmem:[%s2141_s28 + $0x450] sm:$0xff] }
  0x26   : > { %261 = vst [vmem:[%s2146_s29 + $0x160] sm:$0xff] %v260_v44  ;;  %v266_v47 = vld [vmem:[%s2141_s28 + $0x458] sm:$0xff]  ;;  %263 = vst [vmem:[%s2146_s29 + $0x168] sm:$0xff] %v262_v45  ;;  %v268_v48 = vld [vmem:[%s2141_s28 + $0x480] sm:$0xff] }
  0x27   : > { %265 = vst [vmem:[%s2146_s29 + $0x170] sm:$0xff] %v264_v46  ;;  %267 = vst [vmem:[%s2146_s29 + $0x178] sm:$0xff] %v266_v47  ;;  %v270_v49 = vld [vmem:[%s2141_s28 + $0x488] sm:$0xff]  ;;  %v272_v50 = vld [vmem:[%s2141_s28 + $0x4b0] sm:$0xff] }
  0x28   : > { %269 = vst [vmem:[%s2146_s29 + $0x180] sm:$0xff] %v268_v48  ;;  %271 = vst [vmem:[%s2146_s29 + $0x188] sm:$0xff] %v270_v49  ;;  %v274_v51 = vld [vmem:[%s2141_s28 + $0x4b8] sm:$0xff]  ;;  %v276_v52 = vld [vmem:[%s2141_s28 + $0x4e0] sm:$0xff] }
  0x29   : > { %273 = vst [vmem:[%s2146_s29 + $0x190] sm:$0xff] %v272_v50  ;;  %v278_v53 = vld [vmem:[%s2141_s28 + $0x4e8] sm:$0xff]  ;;  %275 = vst [vmem:[%s2146_s29 + $0x198] sm:$0xff] %v274_v51  ;;  %v280_v54 = vld [vmem:[%s2141_s28 + $0x510] sm:$0xff] }
  0x2a   : > { %277 = vst [vmem:[%s2146_s29 + $0x1a0] sm:$0xff] %v276_v52  ;;  %279 = vst [vmem:[%s2146_s29 + $0x1a8] sm:$0xff] %v278_v53  ;;  %v282_v55 = vld [vmem:[%s2141_s28 + $0x518] sm:$0xff]  ;;  %v284_v56 = vld [vmem:[%s2141_s28 + $0x540] sm:$0xff] }
  0x2b   : > { %281 = vst [vmem:[%s2146_s29 + $0x1b0] sm:$0xff] %v280_v54  ;;  %283 = vst [vmem:[%s2146_s29 + $0x1b8] sm:$0xff] %v282_v55  ;;  %v286_v57 = vld [vmem:[%s2141_s28 + $0x548] sm:$0xff]  ;;  %v288_v58 = vld [vmem:[%s2141_s28 + $0x570] sm:$0xff] }
  0x2c   : > { %285 = vst [vmem:[%s2146_s29 + $0x1c0] sm:$0xff] %v284_v56  ;;  %v290_v59 = vld [vmem:[%s2141_s28 + $0x578] sm:$0xff]  ;;  %287 = vst [vmem:[%s2146_s29 + $0x1c8] sm:$0xff] %v286_v57  ;;  %v292_v60 = vld [vmem:[%s2141_s28 + $0x5a0] sm:$0xff] }
  0x2d   : > { %289 = vst [vmem:[%s2146_s29 + $0x1d0] sm:$0xff] %v288_v58  ;;  %291 = vst [vmem:[%s2146_s29 + $0x1d8] sm:$0xff] %v290_v59  ;;  %v294_v61 = vld [vmem:[%s2141_s28 + $0x5a8] sm:$0xff]  ;;  %v296_v62 = vld [vmem:[%s2141_s28 + $0x5d0] sm:$0xff] }
  0x2e   : > { %293 = vst [vmem:[%s2146_s29 + $0x1e0] sm:$0xff] %v292_v60  ;;  %295 = vst [vmem:[%s2146_s29 + $0x1e8] sm:$0xff] %v294_v61  ;;  %v298_v63 = vld [vmem:[%s2141_s28 + $0x5d8] sm:$0xff]  ;;  %v300_v0 = vld [vmem:[%s2141_s28 + $0x600] sm:$0xff] }
  0x2f   : > { %297 = vst [vmem:[%s2146_s29 + $0x1f0] sm:$0xff] %v296_v62  ;;  %v302_v1 = vld [vmem:[%s2141_s28 + $0x608] sm:$0xff]  ;;  %299 = vst [vmem:[%s2146_s29 + $0x1f8] sm:$0xff] %v298_v63  ;;  %v304_v2 = vld [vmem:[%s2141_s28 + $0x630] sm:$0xff] }
  0x30   : > { %301 = vst [vmem:[%s2146_s29 + $0x200] sm:$0xff] %v300_v0  ;;  %303 = vst [vmem:[%s2146_s29 + $0x208] sm:$0xff] %v302_v1  ;;  %v306_v3 = vld [vmem:[%s2141_s28 + $0x638] sm:$0xff]  ;;  %v308_v4 = vld [vmem:[%s2141_s28 + $0x660] sm:$0xff] }
  0x31   : > { %305 = vst [vmem:[%s2146_s29 + $0x210] sm:$0xff] %v304_v2  ;;  %307 = vst [vmem:[%s2146_s29 + $0x218] sm:$0xff] %v306_v3  ;;  %v310_v5 = vld [vmem:[%s2141_s28 + $0x668] sm:$0xff]  ;;  %v312_v6 = vld [vmem:[%s2141_s28 + $0x690] sm:$0xff] }
  0x32   : > { %309 = vst [vmem:[%s2146_s29 + $0x220] sm:$0xff] %v308_v4  ;;  %v314_v7 = vld [vmem:[%s2141_s28 + $0x698] sm:$0xff]  ;;  %311 = vst [vmem:[%s2146_s29 + $0x228] sm:$0xff] %v310_v5  ;;  %v316_v8 = vld [vmem:[%s2141_s28 + $0x6c0] sm:$0xff] }
  0x33   : > { %313 = vst [vmem:[%s2146_s29 + $0x230] sm:$0xff] %v312_v6  ;;  %315 = vst [vmem:[%s2146_s29 + $0x238] sm:$0xff] %v314_v7  ;;  %v318_v9 = vld [vmem:[%s2141_s28 + $0x6c8] sm:$0xff]  ;;  %v320_v10 = vld [vmem:[%s2141_s28 + $0x6f0] sm:$0xff] }
  0x34   : > { %317 = vst [vmem:[%s2146_s29 + $0x240] sm:$0xff] %v316_v8  ;;  %319 = vst [vmem:[%s2146_s29 + $0x248] sm:$0xff] %v318_v9  ;;  %v322_v11 = vld [vmem:[%s2141_s28 + $0x6f8] sm:$0xff]  ;;  %v324_v12 = vld [vmem:[%s2141_s28 + $0x720] sm:$0xff] }
  0x35   : > { %321 = vst [vmem:[%s2146_s29 + $0x250] sm:$0xff] %v320_v10  ;;  %v326_v13 = vld [vmem:[%s2141_s28 + $0x728] sm:$0xff]  ;;  %323 = vst [vmem:[%s2146_s29 + $0x258] sm:$0xff] %v322_v11  ;;  %v328_v14 = vld [vmem:[%s2141_s28 + $0x750] sm:$0xff] }
  0x36   : > { %325 = vst [vmem:[%s2146_s29 + $0x260] sm:$0xff] %v324_v12  ;;  %327 = vst [vmem:[%s2146_s29 + $0x268] sm:$0xff] %v326_v13  ;;  %v330_v15 = vld [vmem:[%s2141_s28 + $0x758] sm:$0xff]  ;;  %v332_v16 = vld [vmem:[%s2141_s28 + $0x780] sm:$0xff] }
  0x37   : > { %329 = vst [vmem:[%s2146_s29 + $0x270] sm:$0xff] %v328_v14  ;;  %331 = vst [vmem:[%s2146_s29 + $0x278] sm:$0xff] %v330_v15  ;;  %v334_v17 = vld [vmem:[%s2141_s28 + $0x788] sm:$0xff]  ;;  %v336_v18 = vld [vmem:[%s2141_s28 + $0x7b0] sm:$0xff] }
  0x38   : > { %333 = vst [vmem:[%s2146_s29 + $0x280] sm:$0xff] %v332_v16  ;;  %v338_v19 = vld [vmem:[%s2141_s28 + $0x7b8] sm:$0xff]  ;;  %335 = vst [vmem:[%s2146_s29 + $0x288] sm:$0xff] %v334_v17  ;;  %v340_v20 = vld [vmem:[%s2141_s28 + $0x7e0] sm:$0xff] }
  0x39   : > { %337 = vst [vmem:[%s2146_s29 + $0x290] sm:$0xff] %v336_v18  ;;  %339 = vst [vmem:[%s2146_s29 + $0x298] sm:$0xff] %v338_v19  ;;  %v342_v21 = vld [vmem:[%s2141_s28 + $0x7e8] sm:$0xff]  ;;  %v344_v22 = vld [vmem:[%s2141_s28 + $0x810] sm:$0xff] }
  0x3a   : > { %341 = vst [vmem:[%s2146_s29 + $0x2a0] sm:$0xff] %v340_v20  ;;  %343 = vst [vmem:[%s2146_s29 + $0x2a8] sm:$0xff] %v342_v21  ;;  %v346_v23 = vld [vmem:[%s2141_s28 + $0x818] sm:$0xff]  ;;  %v348_v24 = vld [vmem:[%s2141_s28 + $0x840] sm:$0xff] }
  0x3b   : > { %345 = vst [vmem:[%s2146_s29 + $0x2b0] sm:$0xff] %v344_v22  ;;  %v350_v25 = vld [vmem:[%s2141_s28 + $0x848] sm:$0xff]  ;;  %347 = vst [vmem:[%s2146_s29 + $0x2b8] sm:$0xff] %v346_v23  ;;  %v352_v26 = vld [vmem:[%s2141_s28 + $0x870] sm:$0xff] }
  0x3c   : > { %349 = vst [vmem:[%s2146_s29 + $0x2c0] sm:$0xff] %v348_v24  ;;  %351 = vst [vmem:[%s2146_s29 + $0x2c8] sm:$0xff] %v350_v25  ;;  %v354_v27 = vld [vmem:[%s2141_s28 + $0x878] sm:$0xff]  ;;  %v356_v28 = vld [vmem:[%s2141_s28 + $0x8a0] sm:$0xff] }
  0x3d   : > { %353 = vst [vmem:[%s2146_s29 + $0x2d0] sm:$0xff] %v352_v26  ;;  %355 = vst [vmem:[%s2146_s29 + $0x2d8] sm:$0xff] %v354_v27  ;;  %v358_v29 = vld [vmem:[%s2141_s28 + $0x8a8] sm:$0xff]  ;;  %v360_v30 = vld [vmem:[%s2141_s28 + $0x8d0] sm:$0xff] }
  0x3e   : > { %357 = vst [vmem:[%s2146_s29 + $0x2e0] sm:$0xff] %v356_v28  ;;  %v362_v31 = vld [vmem:[%s2141_s28 + $0x8d8] sm:$0xff]  ;;  %359 = vst [vmem:[%s2146_s29 + $0x2e8] sm:$0xff] %v358_v29  ;;  %v364_v32 = vld [vmem:[%s2141_s28 + $0x900] sm:$0xff] }
  0x3f   : > { %361 = vst [vmem:[%s2146_s29 + $0x2f0] sm:$0xff] %v360_v30  ;;  %363 = vst [vmem:[%s2146_s29 + $0x2f8] sm:$0xff] %v362_v31  ;;  %v366_v33 = vld [vmem:[%s2141_s28 + $0x908] sm:$0xff]  ;;  %v368_v34 = vld [vmem:[%s2141_s28 + $0x930] sm:$0xff] }
  0x40   : > { %365 = vst [vmem:[%s2146_s29 + $0x300] sm:$0xff] %v364_v32  ;;  %367 = vst [vmem:[%s2146_s29 + $0x308] sm:$0xff] %v366_v33  ;;  %v370_v35 = vld [vmem:[%s2141_s28 + $0x938] sm:$0xff]  ;;  %v372_v36 = vld [vmem:[%s2141_s28 + $0x960] sm:$0xff] }
  0x41   : > { %369 = vst [vmem:[%s2146_s29 + $0x310] sm:$0xff] %v368_v34  ;;  %v374_v37 = vld [vmem:[%s2141_s28 + $0x968] sm:$0xff]  ;;  %371 = vst [vmem:[%s2146_s29 + $0x318] sm:$0xff] %v370_v35  ;;  %v376_v38 = vld [vmem:[%s2141_s28 + $0x990] sm:$0xff] }
  0x42   : > { %373 = vst [vmem:[%s2146_s29 + $0x320] sm:$0xff] %v372_v36  ;;  %375 = vst [vmem:[%s2146_s29 + $0x328] sm:$0xff] %v374_v37  ;;  %v378_v39 = vld [vmem:[%s2141_s28 + $0x998] sm:$0xff]  ;;  %v380_v40 = vld [vmem:[%s2141_s28 + $0x9c0] sm:$0xff] }
  0x43   : > { %377 = vst [vmem:[%s2146_s29 + $0x330] sm:$0xff] %v376_v38  ;;  %379 = vst [vmem:[%s2146_s29 + $0x338] sm:$0xff] %v378_v39  ;;  %v382_v41 = vld [vmem:[%s2141_s28 + $0x9c8] sm:$0xff]  ;;  %v384_v42 = vld [vmem:[%s2141_s28 + $0x9f0] sm:$0xff] }
  0x44   : > { %381 = vst [vmem:[%s2146_s29 + $0x340] sm:$0xff] %v380_v40  ;;  %v386_v43 = vld [vmem:[%s2141_s28 + $0x9f8] sm:$0xff]  ;;  %383 = vst [vmem:[%s2146_s29 + $0x348] sm:$0xff] %v382_v41  ;;  %v388_v44 = vld [vmem:[%s2141_s28 + $0xa20] sm:$0xff] }
  0x45   : > { %385 = vst [vmem:[%s2146_s29 + $0x350] sm:$0xff] %v384_v42  ;;  %387 = vst [vmem:[%s2146_s29 + $0x358] sm:$0xff] %v386_v43  ;;  %v390_v45 = vld [vmem:[%s2141_s28 + $0xa28] sm:$0xff]  ;;  %v392_v46 = vld [vmem:[%s2141_s28 + $0xa50] sm:$0xff] }
  0x46   : > { %389 = vst [vmem:[%s2146_s29 + $0x360] sm:$0xff] %v388_v44  ;;  %391 = vst [vmem:[%s2146_s29 + $0x368] sm:$0xff] %v390_v45  ;;  %v394_v47 = vld [vmem:[%s2141_s28 + $0xa58] sm:$0xff]  ;;  %v396_v48 = vld [vmem:[%s2141_s28 + $0xa80] sm:$0xff] }
  0x47   : > { %393 = vst [vmem:[%s2146_s29 + $0x370] sm:$0xff] %v392_v46  ;;  %v398_v49 = vld [vmem:[%s2141_s28 + $0xa88] sm:$0xff]  ;;  %395 = vst [vmem:[%s2146_s29 + $0x378] sm:$0xff] %v394_v47  ;;  %v400_v50 = vld [vmem:[%s2141_s28 + $0xab0] sm:$0xff] }
  0x48   : > { %397 = vst [vmem:[%s2146_s29 + $0x380] sm:$0xff] %v396_v48  ;;  %399 = vst [vmem:[%s2146_s29 + $0x388] sm:$0xff] %v398_v49  ;;  %v402_v51 = vld [vmem:[%s2141_s28 + $0xab8] sm:$0xff]  ;;  %v404_v52 = vld [vmem:[%s2141_s28 + $0xae0] sm:$0xff] }
  0x49   : > { %401 = vst [vmem:[%s2146_s29 + $0x390] sm:$0xff] %v400_v50  ;;  %403 = vst [vmem:[%s2146_s29 + $0x398] sm:$0xff] %v402_v51  ;;  %v406_v53 = vld [vmem:[%s2141_s28 + $0xae8] sm:$0xff]  ;;  %v408_v54 = vld [vmem:[%s2141_s28 + $0xb10] sm:$0xff] }
  0x4a   : > { %405 = vst [vmem:[%s2146_s29 + $0x3a0] sm:$0xff] %v404_v52  ;;  %v410_v55 = vld [vmem:[%s2141_s28 + $0xb18] sm:$0xff]  ;;  %407 = vst [vmem:[%s2146_s29 + $0x3a8] sm:$0xff] %v406_v53  ;;  %v412_v56 = vld [vmem:[%s2141_s28 + $0xb40] sm:$0xff] }
  0x4b   : > { %409 = vst [vmem:[%s2146_s29 + $0x3b0] sm:$0xff] %v408_v54  ;;  %411 = vst [vmem:[%s2146_s29 + $0x3b8] sm:$0xff] %v410_v55  ;;  %v414_v57 = vld [vmem:[%s2141_s28 + $0xb48] sm:$0xff]  ;;  %v416_v58 = vld [vmem:[%s2141_s28 + $0xb70] sm:$0xff] }
  0x4c   : > { %413 = vst [vmem:[%s2146_s29 + $0x3c0] sm:$0xff] %v412_v56  ;;  %415 = vst [vmem:[%s2146_s29 + $0x3c8] sm:$0xff] %v414_v57  ;;  %v418_v59 = vld [vmem:[%s2141_s28 + $0xb78] sm:$0xff]  ;;  %v420_v60 = vld [vmem:[%s2141_s28 + $0xba0] sm:$0xff] }
  0x4d   : > { %417 = vst [vmem:[%s2146_s29 + $0x3d0] sm:$0xff] %v416_v58  ;;  %v422_v61 = vld [vmem:[%s2141_s28 + $0xba8] sm:$0xff]  ;;  %419 = vst [vmem:[%s2146_s29 + $0x3d8] sm:$0xff] %v418_v59  ;;  %v424_v62 = vld [vmem:[%s2141_s28 + $0xbd0] sm:$0xff] }
  0x4e   : > { %421 = vst [vmem:[%s2146_s29 + $0x3e0] sm:$0xff] %v420_v60  ;;  %423 = vst [vmem:[%s2146_s29 + $0x3e8] sm:$0xff] %v422_v61  ;;  %v426_v63 = vld [vmem:[%s2141_s28 + $0xbd8] sm:$0xff] }
  0x4f   : > { %425 = vst [vmem:[%s2146_s29 + $0x3f0] sm:$0xff] %v424_v62  ;;  %427 = vst [vmem:[%s2146_s29 + $0x3f8] sm:$0xff] %v426_v63 }
  0x50 PF: > { %p1670_p5 = scmp.ge.s32.totalorder %s2074_s17, 1  ;;  %p440_p6 = scmp.lt.s32.totalorder %s2074_s17, 4 }
  0x52   : > { %p441_p7 = pnand %p1670_p5, %p440_p6 }
  0x53   : > { %s447_s30 = sand.u32 (!%p441_p7), 1, %s2066_s15   ;;  %s1672_s5 = sshll.u32 (!%p441_p7), %s2121_s18, 2 }
  0x54   : > { %444 = sbr.rel (%p441_p7) target bundleno = 1268 (0x4f4), region = 55  ;;  %s1671_s6 = sshll.u32 (!%p441_p7), %s447_s30, 10 }
  0x55   : > { %p473_p8 = scmp.lt.s32.totalorder (!%p441_p7), %s1672_s5, 11  ;;  %s2411_s10 = scalar_lea.vmem (!%p441_p7), [#allocation5], %s1671_s6 }
  0x56   : > { %p1673_p9 = scmp.ne.s32.totalorder (!%p441_p7), %s2121_s18, 0 }
  0x59   : > { %s2682_s5 = smov (!%p473_p8, %s1672_s5), 11  ;;  %480 = sbr.rel (%p1673_p9) target bundleno = 97 (0x61), region = 63 }
  0x5a   : > { %s475_s9 = scalar_lea.vmem %s2676_s3, %s2682_s5 }
  0x5e   : > { %vm481_vm0 = vcmask 1024   ;;  %v2076_v0 = vmov -1e+30   ;;  %v2077_v1 = vmov 0.0  }
  0x5f   : > { %482 = vst.msk [vmem:[#allocation2] sm:$0x3] %vm481_vm0, %v2076_v0  ;;  %483 = vst.msk [vmem:[#allocation3] sm:$0x3] %vm481_vm0, %v2077_v1 }
  0x60   : > { %484 = vst.msk [vmem:[#allocation4] sm:$0x3] %vm481_vm0, %v2077_v1 }
  0x61 PF: > { %v1845_v2 = vld [vmem:[%s2411_s10 + $0xe4] ss:$16 sps:$4 sm:$0xff]   ;;  %v1849_v4 = vld [vmem:[%s2411_s10 + $0xe0] ss:$16 sps:$4 sm:$0xff]   ;;  %v2078_v10 = vmov 0   ;;  %v491_v41 = vlaneseq  ;;  %s1806_s15 = sshll.u32 %s2121_s18, 9 }
  0x62   : > { %v1847_v3 = vld [vmem:[%s2411_s10 + $0x2e4] ss:$16 sps:$4 sm:$0xff]   ;;  %1280 = vmatprep.subr.bf16.mxu0 %v1845_v2  ;;  %v1850_v5 = vld [vmem:[%s2411_s10 + $0x2e0] ss:$16 sps:$4 sm:$0xff]   ;;  %1843 = vset.pattern.permute.xlu0 %v2078_v10  ;;  %v2079_v39 = vmov 1983009808  }
  0x63   : > { %1321 = vmatprep.subr.bf16.mxu1 %v1847_v3  ;;  %v1851_v6 = vld [vmem:[%s2411_s10 + $0xc4] ss:$16 sps:$4 sm:$0xff]   ;;  %1281 = vmatpush1.bf16.msra.mxu0 %v1849_v4  ;;  %v1855_v8 = vld [vmem:[%s2411_s10 + $0xc0] ss:$16 sps:$4 sm:$0xff]   ;;  %v489_v40 = vunpack.c.l.s4 %v2079_v39  ;;  %v2454_v46 = vshrl.u32 %v491_v41, 7  ;;  %vm1475_vm3 = vcmask 1041408  }
  0x64   : > { %1322 = vmatpush1.bf16.msra.mxu1 %v1850_v5  ;;  %v1853_v7 = vld [vmem:[%s2411_s10 + $0x2c4] ss:$16 sps:$4 sm:$0xff]   ;;  %1282 = vmatprep.subr.bf16.mxu0 %v1851_v6  ;;  %v1856_v9 = vld [vmem:[%s2411_s10 + $0x2c0] ss:$16 sps:$4 sm:$0xff]   ;;  %v1974_v39 = vld [vmem:[%s2411_s10 + $0x4c] ss:$16 sps:$4 sm:$0xff]  }
  0x65   : > { %1323 = vmatprep.subr.bf16.mxu1 %v1853_v7  ;;  %v1857_v11 = vld [vmem:[%s2411_s10 + $0xa4] ss:$16 sps:$4 sm:$0xff]   ;;  %1844 = vset.pattern.permute.xlu1 %v2078_v10  ;;  %v1861_v13 = vld [vmem:[%s2411_s10 + $0xa0] ss:$16 sps:$4 sm:$0xff]   ;;  %v490_v45 = vunpack.c.0.s8 %v489_v40  ;;  %v1977_v40 = vld [vmem:[%s2411_s10 + $0x24c] ss:$16 sps:$4 sm:$0xff]  }
  0x66   : > { %v1859_v12 = vld [vmem:[%s2411_s10 + $0x2a4] ss:$16 sps:$4 sm:$0xff]   ;;  %v1862_v14 = vld [vmem:[%s2411_s10 + $0x2a0] ss:$16 sps:$4 sm:$0xff]   ;;  %vm1579_vm9 = vcmask 1024   ;;  %p1809_p10 = scmp.ne.s32.totalorder %s2121_s18, 2 }
  0x67   : > { %1283 = vmatpush1.bf16.msra.mxu0 %v1855_v8  ;;  %v1863_v15 = vld [vmem:[%s2411_s10 + $0x84] ss:$16 sps:$4 sm:$0xff]   ;;  %v1867_v17 = vld [vmem:[%s2411_s10 + $0x80] ss:$16 sps:$4 sm:$0xff]   ;;  %v493_v52 = vsub.s32 %v490_v45, %v2454_v46  ;;  %v1983_v45 = vld [vmem:[%s2411_s10 + $0x22c] ss:$16 sps:$4 sm:$0xff]  }
  0x68   : > { %1324 = vmatpush1.bf16.msra.mxu1 %v1856_v9  ;;  %1284 = vmatprep.subr.bf16.mxu0 %v1857_v11  ;;  %v1865_v16 = vld [vmem:[%s2411_s10 + $0x284] ss:$16 sps:$4 sm:$0xff]   ;;  %v1868_v18 = vld [vmem:[%s2411_s10 + $0x280] ss:$16 sps:$4 sm:$0xff]  }
  0x69   : > { %1325 = vmatprep.subr.bf16.mxu1 %v1859_v12  ;;  %v1869_v19 = vld [vmem:[%s2411_s10 + $0x64] ss:$16 sps:$4 sm:$0xff]   ;;  %v1873_v21 = vld [vmem:[%s2411_s10 + $0x60] ss:$16 sps:$4 sm:$0xff]  }
  0x6a   : > { %v1871_v20 = vld [vmem:[%s2411_s10 + $0x264] ss:$16 sps:$4 sm:$0xff]   ;;  %v1874_v22 = vld [vmem:[%s2411_s10 + $0x260] ss:$16 sps:$4 sm:$0xff]  }
  0x6b   : > { %1285 = vmatpush1.bf16.msra.mxu0 %v1861_v13  ;;  %v1875_v23 = vld [vmem:[%s2411_s10 + $0x44] ss:$16 sps:$4 sm:$0xff]   ;;  %v1879_v25 = vld [vmem:[%s2411_s10 + $0x40] ss:$16 sps:$4 sm:$0xff]  }
  0x6c   : > { %1326 = vmatpush1.bf16.msra.mxu1 %v1862_v14  ;;  %1286 = vmatprep.subr.bf16.mxu0 %v1863_v15  ;;  %v1877_v24 = vld [vmem:[%s2411_s10 + $0x244] ss:$16 sps:$4 sm:$0xff]   ;;  %v1880_v26 = vld [vmem:[%s2411_s10 + $0x240] ss:$16 sps:$4 sm:$0xff]  }
  0x6d   : > { %1327 = vmatprep.subr.bf16.mxu1 %v1865_v16  ;;  %v1881_v27 = vld [vmem:[%s2411_s10 + $0x24] ss:$16 sps:$4 sm:$0xff]   ;;  %v1885_v29 = vld [vmem:[%s2411_s10 + $0x20] ss:$16 sps:$4 sm:$0xff]  }
  0x6e   : > { %v1883_v28 = vld [vmem:[%s2411_s10 + $0x224] ss:$16 sps:$4 sm:$0xff]   ;;  %v1886_v30 = vld [vmem:[%s2411_s10 + $0x220] ss:$16 sps:$4 sm:$0xff]  }
  0x6f   : > { %1287 = vmatpush1.bf16.msra.mxu0 %v1867_v17  ;;  %v1887_v31 = vld [vmem:[%s2411_s10 + $0x4] ss:$16 sps:$4 sm:$0xff]   ;;  %v1891_v33 = vld [vmem:[%s2411_s10] ss:$16 sps:$4 sm:$0xff]   ;;  %v1944_v17 = vld [vmem:[%s2411_s10 + $0xec] ss:$16 sps:$4 sm:$0xff]  }
  0x70   : > { %1328 = vmatpush1.bf16.msra.mxu1 %v1868_v18  ;;  %1288 = vmatprep.subr.bf16.mxu0 %v1869_v19  ;;  %v1889_v32 = vld [vmem:[%s2411_s10 + $0x204] ss:$16 sps:$4 sm:$0xff]   ;;  %v1892_v34 = vld [vmem:[%s2411_s10 + $0x200] ss:$16 sps:$4 sm:$0xff]   ;;  %v1947_v18 = vld [vmem:[%s2411_s10 + $0x2ec] ss:$16 sps:$4 sm:$0xff]  }
  0x71   : > { %1329 = vmatprep.subr.bf16.mxu1 %v1871_v20  ;;  %v1893_v35 = vld [vmem:[%s2411_s10 + $0x1e4] ss:$16 sps:$4 sm:$0xff]   ;;  %v1897_v37 = vld [vmem:[%s2411_s10 + $0x1e0] ss:$16 sps:$4 sm:$0xff]  }
  0x72   : > { %v1895_v36 = vld [vmem:[%s2411_s10 + $0x3e4] ss:$16 sps:$4 sm:$0xff]   ;;  %v1898_v38 = vld [vmem:[%s2411_s10 + $0x3e0] ss:$16 sps:$4 sm:$0xff]  }
  0x73   : > { %1289 = vmatpush1.bf16.msra.mxu0 %v1873_v21  ;;  %v1899_v42 = vld [vmem:[%s2411_s10 + $0x1c4] ss:$16 sps:$4 sm:$0xff]   ;;  %v1903_v44 = vld [vmem:[%s2411_s10 + $0x1c0] ss:$16 sps:$4 sm:$0xff]   ;;  %v1942_v21 = vld [vmem:[%s2411_s10 + $0xe8] ss:$16 sps:$4 sm:$0xff]  }
  0x74   : > { %1330 = vmatpush1.bf16.msra.mxu1 %v1874_v22  ;;  %1290 = vmatprep.subr.bf16.mxu0 %v1875_v23  ;;  %v1901_v43 = vld [vmem:[%s2411_s10 + $0x3c4] ss:$16 sps:$4 sm:$0xff]   ;;  %v1904_v47 = vld [vmem:[%s2411_s10 + $0x3c0] ss:$16 sps:$4 sm:$0xff]   ;;  %v1945_v22 = vld [vmem:[%s2411_s10 + $0x2e8] ss:$16 sps:$4 sm:$0xff]  }
  0x75   : > { %1331 = vmatprep.subr.bf16.mxu1 %v1877_v24  ;;  %v1905_v48 = vld [vmem:[%s2411_s10 + $0x1a4] ss:$16 sps:$4 sm:$0xff]   ;;  %v1909_v50 = vld [vmem:[%s2411_s10 + $0x1a0] ss:$16 sps:$4 sm:$0xff]   ;;  %v1950_v23 = vld [vmem:[%s2411_s10 + $0xcc] ss:$16 sps:$4 sm:$0xff]  }
  0x76   : > { %v1907_v49 = vld [vmem:[%s2411_s10 + $0x3a4] ss:$16 sps:$4 sm:$0xff]   ;;  %v1910_v51 = vld [vmem:[%s2411_s10 + $0x3a0] ss:$16 sps:$4 sm:$0xff]   ;;  %v1953_v24 = vld [vmem:[%s2411_s10 + $0x2cc] ss:$16 sps:$4 sm:$0xff]  }
  0x77   : > { %1291 = vmatpush1.bf16.msra.mxu0 %v1879_v25  ;;  %v1911_v53 = vld [vmem:[%s2411_s10 + $0x184] ss:$16 sps:$4 sm:$0xff]   ;;  %v485_v55 = vld [vmem:[%s2673_s0] sm:$0xff] }
  0x78   : > { %1332 = vmatpush1.bf16.msra.mxu1 %v1880_v26  ;;  %1292 = vmatprep.subr.bf16.mxu0 %v1881_v27  ;;  %v1913_v54 = vld [vmem:[%s2411_s10 + $0x384] ss:$16 sps:$4 sm:$0xff]   ;;  %v1915_v56 = vld [vmem:[%s2411_s10 + $0x180] ss:$16 sps:$4 sm:$0xff]   ;;  %v494_v57 = vrot.slane %v485_v55, %v493_v52  ;;  %v487_v58 = vcombine.high %v485_v55, %v485_v55  ;;  %v1948_v25 = vld [vmem:[%s2411_s10 + $0xc8] ss:$16 sps:$4 sm:$0xff]  }
  0x79   : > { %1333 = vmatprep.subr.bf16.mxu1 %v1883_v28  ;;  %v1916_v59 = vld [vmem:[%s2411_s10 + $0x380] ss:$16 sps:$4 sm:$0xff]   ;;  %v1917_v60 = vld [vmem:[%s2411_s10 + $0x164] ss:$16 sps:$4 sm:$0xff]   ;;  %v1951_v26 = vld [vmem:[%s2411_s10 + $0x2c8] ss:$16 sps:$4 sm:$0xff]  }
  0x7a   : > { %v1919_v61 = vld [vmem:[%s2411_s10 + $0x364] ss:$16 sps:$4 sm:$0xff]   ;;  %v502_v62 = vcombine.high %v494_v57, %v494_v57  ;;  %v501_v63 = vrot.slane %v487_v58, %v493_v52  ;;  %v1921_v0 = vld [vmem:[%s2411_s10 + $0x160] ss:$16 sps:$4 sm:$0xff]   ;;  %v2487_v19 = vpack.c.bf16 %v494_v57, %v494_v57  ;;  %v1956_v27 = vld [vmem:[%s2411_s10 + $0xac] ss:$16 sps:$4 sm:$0xff]  }
  0x7b   : > { %1293 = vmatpush1.bf16.msra.mxu0 %v1885_v29  ;;  %v1922_v3 = vld [vmem:[%s2411_s10 + $0x360] ss:$16 sps:$4 sm:$0xff]   ;;  %v1923_v4 = vld [vmem:[%s2411_s10 + $0x144] ss:$16 sps:$4 sm:$0xff]   ;;  %v1959_v28 = vld [vmem:[%s2411_s10 + $0x2ac] ss:$16 sps:$4 sm:$0xff]  }
  0x7c   : > { %1334 = vmatpush1.bf16.msra.mxu1 %v1886_v30  ;;  %1294 = vmatprep.subr.bf16.mxu0 %v1887_v31  ;;  %v509_v1 = vpack.c.bf16 %v502_v62, %v502_v62  ;;  %v503_v2 = vcombine.high %v501_v63, %v501_v63  ;;  %v1925_v5 = vld [vmem:[%s2411_s10 + $0x344] ss:$16 sps:$4 sm:$0xff]   ;;  %v1927_v7 = vld [vmem:[%s2411_s10 + $0x140] ss:$16 sps:$4 sm:$0xff]   ;;  %v2489_v20 = vpack.c.bf16 %v501_v63, %v501_v63  ;;  %v1954_v29 = vld [vmem:[%s2411_s10 + $0xa8] ss:$16 sps:$4 sm:$0xff]  }
  0x7d   : > { %1335 = vmatprep.subr.bf16.mxu1 %v1889_v32  ;;  %v1928_v8 = vld [vmem:[%s2411_s10 + $0x340] ss:$16 sps:$4 sm:$0xff]   ;;  %v1929_v9 = vld [vmem:[%s2411_s10 + $0x124] ss:$16 sps:$4 sm:$0xff]   ;;  %v1957_v30 = vld [vmem:[%s2411_s10 + $0x2a8] ss:$16 sps:$4 sm:$0xff]  }
  0x7e   : > { %v511_v6 = vpack.c.bf16 %v503_v2, %v503_v2  ;;  %1312 = vmatprep.mubr.bf16.mxu0 %v509_v1  ;;  %v1931_v10 = vld [vmem:[%s2411_s10 + $0x324] ss:$16 sps:$4 sm:$0xff]   ;;  %v1933_v11 = vld [vmem:[%s2411_s10 + $0x120] ss:$16 sps:$4 sm:$0xff]   ;;  %v1962_v31 = vld [vmem:[%s2411_s10 + $0x8c] ss:$16 sps:$4 sm:$0xff]  }
  0x7f   : > { %1295 = vmatpush1.bf16.msra.mxu0 %v1891_v33  ;;  %v1934_v12 = vld [vmem:[%s2411_s10 + $0x320] ss:$16 sps:$4 sm:$0xff]   ;;  %v1935_v13 = vld [vmem:[%s2411_s10 + $0x104] ss:$16 sps:$4 sm:$0xff]   ;;  %v1965_v32 = vld [vmem:[%s2411_s10 + $0x28c] ss:$16 sps:$4 sm:$0xff]  }
  0x80   : > { %1336 = vmatpush1.bf16.msra.mxu1 %v1892_v34  ;;  %1296 = vmatprep.subr.bf16.mxu0 %v1893_v35  ;;  %v1937_v14 = vld [vmem:[%s2411_s10 + $0x304] ss:$16 sps:$4 sm:$0xff]   ;;  %v1939_v15 = vld [vmem:[%s2411_s10 + $0x100] ss:$16 sps:$4 sm:$0xff]   ;;  %v1960_v33 = vld [vmem:[%s2411_s10 + $0x88] ss:$16 sps:$4 sm:$0xff]  }
  0x81   : > { %1337 = vmatprep.subr.bf16.mxu1 %v1895_v36  ;;  %1353 = vmatprep.mubr.bf16.mxu1 %v511_v6  ;;  %v1940_v16 = vld [vmem:[%s2411_s10 + $0x300] ss:$16 sps:$4 sm:$0xff]   ;;  %v1963_v34 = vld [vmem:[%s2411_s10 + $0x288] ss:$16 sps:$4 sm:$0xff]   ;;  %v1968_v35 = vld [vmem:[%s2411_s10 + $0x6c] ss:$16 sps:$4 sm:$0xff]  }
  0x82   : > { %v1971_v36 = vld [vmem:[%s2411_s10 + $0x26c] ss:$16 sps:$4 sm:$0xff]   ;;  %v1984_v52 = vld [vmem:[%s2411_s10 + $0x8] ss:$16 sps:$4 sm:$0xff]  }
  0x83   : > { %1297 = vmatpush2.bf16.msra.mxu0 %v1897_v37  ;;  %v1966_v37 = vld [vmem:[%s2411_s10 + $0x68] ss:$16 sps:$4 sm:$0xff]   ;;  %v1995_v55 = vld [vmem:[%s2411_s10 + $0x3ec] ss:$16 sps:$4 sm:$0xff]  }
  0x84   : > { %1338 = vmatpush2.bf16.msra.mxu1 %v1898_v38  ;;  %1298 = vmatprep.subr.bf16.mxu0 %v1899_v42  ;;  %v1969_v38 = vld [vmem:[%s2411_s10 + $0x268] ss:$16 sps:$4 sm:$0xff]   ;;  %v1998_v58 = vld [vmem:[%s2411_s10 + $0x1cc] ss:$16 sps:$4 sm:$0xff]  }
  0x85   : > { %1339 = vmatprep.subr.bf16.mxu1 %v1901_v43  ;;  %v1972_v42 = vld [vmem:[%s2411_s10 + $0x48] ss:$16 sps:$4 sm:$0xff]   ;;  %v2004_v62 = vld [vmem:[%s2411_s10 + $0x1ac] ss:$16 sps:$4 sm:$0xff]  }
  0x86   : > { %v1975_v43 = vld [vmem:[%s2411_s10 + $0x248] ss:$16 sps:$4 sm:$0xff]   ;;  %v2007_v63 = vld [vmem:[%s2411_s10 + $0x3ac] ss:$16 sps:$4 sm:$0xff]  }
  0x87   : > { %1299 = vmatpush2.bf16.msra.mxu0 %v1903_v44  ;;  %v1980_v44 = vld [vmem:[%s2411_s10 + $0x2c] ss:$16 sps:$4 sm:$0xff]   ;;  %v1993_v57 = vld [vmem:[%s2411_s10 + $0x3e8] ss:$16 sps:$4 sm:$0xff]  }
  0x88   : > { %1340 = vmatpush2.bf16.msra.mxu1 %v1904_v47  ;;  %1300 = vmatprep.subr.bf16.mxu0 %v1905_v48  ;;  %v1463_v47 = vld [vmem:[%s2674_s1] sm:$0x3]  ;;  %v2010_v2 = vld [vmem:[%s2411_s10 + $0x18c] ss:$16 sps:$4 sm:$0xff]  }
  0x89   : > { %1341 = vmatprep.subr.bf16.mxu1 %v1907_v49  ;;  %1465 = vperm.xlu0 %1843, %v1463_v47   ;;  %v1978_v48 = vld [vmem:[%s2411_s10 + $0x28] ss:$16 sps:$4 sm:$0xff]  }
  0x8a   : > { %v1981_v49 = vld [vmem:[%s2411_s10 + $0x228] ss:$16 sps:$4 sm:$0xff]  }
  0x8b   : > { %1301 = vmatpush2.bf16.msra.mxu0 %v1909_v50  ;;  %v1986_v50 = vld [vmem:[%s2411_s10 + $0xc] ss:$16 sps:$4 sm:$0xff]  }
  0x8c   : > { %1342 = vmatpush2.bf16.msra.mxu1 %v1910_v51  ;;  %1302 = vmatprep.subr.bf16.mxu0 %v1911_v53  ;;  %v1989_v51 = vld [vmem:[%s2411_s10 + $0x20c] ss:$16 sps:$4 sm:$0xff]   ;;  %v1987_v53 = vld [vmem:[%s2411_s10 + $0x208] ss:$16 sps:$4 sm:$0xff]  }
  0x8d   : > { %1343 = vmatprep.subr.bf16.mxu1 %v1913_v54  ;;  %v1992_v54 = vld [vmem:[%s2411_s10 + $0x1ec] ss:$16 sps:$4 sm:$0xff]  }
  0x8f   : > { %1303 = vmatpush2.bf16.msra.mxu0 %v1915_v56  ;;  %v1990_v56 = vld [vmem:[%s2411_s10 + $0x1e8] ss:$16 sps:$4 sm:$0xff]  }
  0x90   : > { %1344 = vmatpush2.bf16.msra.mxu1 %v1916_v59  ;;  %1304 = vmatprep.subr.bf16.mxu0 %v1917_v60  ;;  %v2001_v59 = vld [vmem:[%s2411_s10 + $0x3cc] ss:$16 sps:$4 sm:$0xff]   ;;  %v1996_v60 = vld [vmem:[%s2411_s10 + $0x1c8] ss:$16 sps:$4 sm:$0xff]  }
  0x91   : > { %1345 = vmatprep.subr.bf16.mxu1 %v1919_v61  ;;  %v1999_v61 = vld [vmem:[%s2411_s10 + $0x3c8] ss:$16 sps:$4 sm:$0xff]  }
  0x93   : > { %1305 = vmatpush2.bf16.msra.mxu0 %v1921_v0  ;;  %v2002_v0 = vld [vmem:[%s2411_s10 + $0x1a8] ss:$16 sps:$4 sm:$0xff]  }
  0x94   : > { %1346 = vmatpush2.bf16.msra.mxu1 %v1922_v3  ;;  %1306 = vmatprep.subr.bf16.mxu0 %v1923_v4  ;;  %v2013_v3 = vld [vmem:[%s2411_s10 + $0x38c] ss:$16 sps:$4 sm:$0xff]   ;;  %v2008_v4 = vld [vmem:[%s2411_s10 + $0x188] ss:$16 sps:$4 sm:$0xff]  }
  0x95   : > { %1347 = vmatprep.subr.bf16.mxu1 %v1925_v5  ;;  %v2011_v5 = vld [vmem:[%s2411_s10 + $0x388] ss:$16 sps:$4 sm:$0xff]  }
  0x97   : > { %1307 = vmatpush2.bf16.msra.mxu0 %v1927_v7  ;;  %v2019_v7 = vld [vmem:[%s2411_s10 + $0x36c] ss:$16 sps:$4 sm:$0xff]  }
  0x98   : > { %1348 = vmatpush2.bf16.msra.mxu1 %v1928_v8  ;;  %1308 = vmatprep.subr.bf16.mxu0 %v1929_v9  ;;  %v2014_v8 = vld [vmem:[%s2411_s10 + $0x168] ss:$16 sps:$4 sm:$0xff]  }
  0x99   : > { %1349 = vmatprep.subr.bf16.mxu1 %v1931_v10  ;;  %v2017_v9 = vld [vmem:[%s2411_s10 + $0x368] ss:$16 sps:$4 sm:$0xff]   ;;  %v2022_v10 = vld [vmem:[%s2411_s10 + $0x14c] ss:$16 sps:$4 sm:$0xff]  }
  0x9b   : > { %1309 = vmatpush2.bf16.msra.mxu0 %v1933_v11  ;;  %v2025_v11 = vld [vmem:[%s2411_s10 + $0x34c] ss:$16 sps:$4 sm:$0xff]  }
  0x9c   : > { %1350 = vmatpush2.bf16.msra.mxu1 %v1934_v12  ;;  %1310 = vmatprep.subr.bf16.mxu0 %v1935_v13  ;;  %v2020_v12 = vld [vmem:[%s2411_s10 + $0x148] ss:$16 sps:$4 sm:$0xff]  }
  0x9d   : > { %1351 = vmatprep.subr.bf16.mxu1 %v1937_v14  ;;  %v2023_v13 = vld [vmem:[%s2411_s10 + $0x348] ss:$16 sps:$4 sm:$0xff]   ;;  %v2028_v14 = vld [vmem:[%s2411_s10 + $0x12c] ss:$16 sps:$4 sm:$0xff]  }
  0x9f   : > { %1311 = vmatpush2.bf16.msra.mxu0 %v1939_v15  ;;  %v2031_v15 = vld [vmem:[%s2411_s10 + $0x32c] ss:$16 sps:$4 sm:$0xff]  }
  0xa0   : > { %1352 = vmatpush2.bf16.msra.mxu1 %v1940_v16  ;;  %1362 = vmatprep.subr.bf16.mxu0 %v1944_v17  ;;  %v2026_v16 = vld [vmem:[%s2411_s10 + $0x128] ss:$16 sps:$4 sm:$0xff]  }
  0xa1   : > { %1403 = vmatprep.subr.bf16.mxu1 %v1947_v18  ;;  %v2029_v17 = vld [vmem:[%s2411_s10 + $0x328] ss:$16 sps:$4 sm:$0xff]   ;;  %v2034_v18 = vld [vmem:[%s2411_s10 + $0x10c] ss:$16 sps:$4 sm:$0xff]  }
  0xa2   : > { %1313 = vmatmul.mubr.bf16.vlgmr.msra.gmra.mxu0 %v2487_v19 }
  0xa3   : > { %1354 = vmatmul.mubr.bf16.vlgmr.msra.gmra.mxu1 %v2489_v20  ;;  %1363 = vmatpush1.bf16.msra.mxu0 %v1942_v21  ;;  %v2037_v21 = vld [vmem:[%s2411_s10 + $0x30c] ss:$16 sps:$4 sm:$0xff]  }
  0xa4   : > { %1404 = vmatpush1.bf16.msra.mxu1 %v1945_v22  ;;  %1364 = vmatprep.subr.bf16.mxu0 %v1950_v23  ;;  %v2032_v22 = vld [vmem:[%s2411_s10 + $0x108] ss:$16 sps:$4 sm:$0xff]  }
  0xa5   : > { %1405 = vmatprep.subr.bf16.mxu1 %v1953_v24  ;;  %1394 = vmatprep.mubr.bf16.mxu0 %v509_v1  ;;  %v2005_v1 = vld [vmem:[%s2411_s10 + $0x3a8] ss:$16 sps:$4 sm:$0xff]  }
  0xa6   : > { %1435 = vmatprep.mubr.bf16.mxu1 %v511_v6  ;;  %v2016_v6 = vld [vmem:[%s2411_s10 + $0x16c] ss:$16 sps:$4 sm:$0xff]   ;;  %v2035_v23 = vld [vmem:[%s2411_s10 + $0x308] ss:$16 sps:$4 sm:$0xff]  }
  0xa7   : > { %1365 = vmatpush1.bf16.msra.mxu0 %v1948_v25 }
  0xa8   : > { %1406 = vmatpush1.bf16.msra.mxu1 %v1951_v26  ;;  %1366 = vmatprep.subr.bf16.mxu0 %v1956_v27 }
  0xa9   : > { %1407 = vmatprep.subr.bf16.mxu1 %v1959_v28 }
  0xab   : > { %1367 = vmatpush1.bf16.msra.mxu0 %v1954_v29 }
  0xac   : > { %1408 = vmatpush1.bf16.msra.mxu1 %v1957_v30  ;;  %1368 = vmatprep.subr.bf16.mxu0 %v1962_v31 }
  0xad   : > { %1409 = vmatprep.subr.bf16.mxu1 %v1965_v32  ;;  %v1454_v32 = vand.u32 127, %v491_v41 }
  0xaf   : > { %1369 = vmatpush1.bf16.msra.mxu0 %v1960_v33  ;;  %v1455_v33 = vadd.s32 128, %v1454_v32  ;;  %v1456_v41 = vadd.s32 256, %v1454_v32 }
  0xb0   : > { %1410 = vmatpush1.bf16.msra.mxu1 %v1963_v34  ;;  %1370 = vmatprep.subr.bf16.mxu0 %v1968_v35  ;;  %v1458_v34 = vstv %s1806_s15 }
  0xb1   : > { %1411 = vmatprep.subr.bf16.mxu1 %v1971_v36  ;;  %v2588_v47 = vadd.s32 %v1458_v34, %v1456_v41 }
  0xb3   : > { %1371 = vmatpush1.bf16.msra.mxu0 %v1966_v37 }
  0xb4   : > { %1412 = vmatpush1.bf16.msra.mxu1 %v1969_v38  ;;  %1372 = vmatprep.subr.bf16.mxu0 %v1974_v39 }
  0xb5   : > { %1413 = vmatprep.subr.bf16.mxu1 %v1977_v40  ;;  %v1457_v40 = vadd.s32 384, %v1454_v32 }
  0xb7   : > { %1373 = vmatpush1.bf16.msra.mxu0 %v1972_v42 }
  0xb8   : > { %1414 = vmatpush1.bf16.msra.mxu1 %v1975_v43  ;;  %1374 = vmatprep.subr.bf16.mxu0 %v1980_v44 }
  0xb9   : > { %1415 = vmatprep.subr.bf16.mxu1 %v1983_v45 }
  0xbb   : > { %1375 = vmatpush1.bf16.msra.mxu0 %v1978_v48 }
  0xbc   : > { %1416 = vmatpush1.bf16.msra.mxu1 %v1981_v49  ;;  %1376 = vmatprep.subr.bf16.mxu0 %v1986_v50 }
  0xbd   : > { %1417 = vmatprep.subr.bf16.mxu1 %v1989_v51  ;;  %v2590_v51 = vadd.s32 %v1458_v34, %v1457_v40 }
  0xbf   : > { %1377 = vmatpush1.bf16.msra.mxu0 %v1984_v52 }
  0xc0   : > { %1418 = vmatpush1.bf16.msra.mxu1 %v1987_v53  ;;  %1378 = vmatprep.subr.bf16.mxu0 %v1992_v54 }
  0xc1   : > { %1419 = vmatprep.subr.bf16.mxu1 %v1995_v55 }
  0xc3   : > { %1379 = vmatpush2.bf16.msra.mxu0 %v1990_v56 }
  0xc4   : > { %1420 = vmatpush2.bf16.msra.mxu1 %v1993_v57  ;;  %1380 = vmatprep.subr.bf16.mxu0 %v1998_v58 }
  0xc5   : > { %1421 = vmatprep.subr.bf16.mxu1 %v2001_v59 }
  0xc7   : > { %1381 = vmatpush2.bf16.msra.mxu0 %v1996_v60 }
  0xc8   : > { %1422 = vmatpush2.bf16.msra.mxu1 %v1999_v61  ;;  %1382 = vmatprep.subr.bf16.mxu0 %v2004_v62 }
  0xc9   : > { %1423 = vmatprep.subr.bf16.mxu1 %v2007_v63 }
  0xcb   : > { %1383 = vmatpush2.bf16.msra.mxu0 %v2002_v0 }
  0xcc   : > { %1424 = vmatpush2.bf16.msra.mxu1 %v2005_v1  ;;  %1384 = vmatprep.subr.bf16.mxu0 %v2010_v2 }
  0xcd   : > { %1425 = vmatprep.subr.bf16.mxu1 %v2013_v3 }
  0xcf   : > { %1385 = vmatpush2.bf16.msra.mxu0 %v2008_v4 }
  0xd0   : > { %1426 = vmatpush2.bf16.msra.mxu1 %v2011_v5  ;;  %1386 = vmatprep.subr.bf16.mxu0 %v2016_v6 }
  0xd1   : > { %1427 = vmatprep.subr.bf16.mxu1 %v2019_v7 }
  0xd3   : > { %1387 = vmatpush2.bf16.msra.mxu0 %v2014_v8 }
  0xd4   : > { %1428 = vmatpush2.bf16.msra.mxu1 %v2017_v9  ;;  %1388 = vmatprep.subr.bf16.mxu0 %v2022_v10 }
  0xd5   : > { %1429 = vmatprep.subr.bf16.mxu1 %v2025_v11 }
  0xd7   : > { %1389 = vmatpush2.bf16.msra.mxu0 %v2020_v12  ;;  %v1514_v12 = vsub.s32 0, %v2454_v46 }
  0xd8   : > { %1430 = vmatpush2.bf16.msra.mxu1 %v2023_v13  ;;  %1390 = vmatprep.subr.bf16.mxu0 %v2028_v14  ;;  %v1518_v13 = vsub.s32 1, %v2454_v46 }
  0xd9   : > { %1431 = vmatprep.subr.bf16.mxu1 %v2031_v15 }
  0xdb   : > { %1391 = vmatpush2.bf16.msra.mxu0 %v2026_v16  ;;  %v1522_v16 = vsub.s32 2, %v2454_v46 }
  0xdc   : > { %1432 = vmatpush2.bf16.msra.mxu1 %v2029_v17  ;;  %1392 = vmatprep.subr.bf16.mxu0 %v2034_v18  ;;  %v1526_v17 = vsub.s32 3, %v2454_v46 }
  0xdd   : > { %1433 = vmatprep.subr.bf16.mxu1 %v2037_v21 }
  0xdf   : > { %1393 = vmatpush2.bf16.msra.mxu0 %v2032_v22  ;;  %v1510_v22 = vld [vmem:[%s475_s9] sm:$0xf] }
  0xe0   : > { %1434 = vmatpush2.bf16.msra.mxu1 %v2035_v23 }
  0xe2   : > { %1395 = vmatmul.mubr.bf16.vlgmr.msra.gmra.mxu0 %v2487_v19  ;;  %v2566_v19 = vadd.s32 %v1458_v34, %v1454_v32 }
  0xe3   : > { %1436 = vmatmul.mubr.bf16.vlgmr.msra.gmra.mxu1 %v2489_v20  ;;  %v2568_v20 = vadd.s32 %v1458_v34, %v1455_v33 }
 0x104   : > { %v2570_v37 = vpop.permute.xlu0 %1465 }
 0x105   : > { %vm1467_vm1 = vcmp.eq.s32.totalorder %v2566_v19, %v2570_v37  ;;  %vm1468_vm2 = vcmp.eq.s32.totalorder %v2568_v20, %v2570_v37  ;;  %vm1469_vm4 = vcmp.eq.s32.totalorder %v2588_v47, %v2570_v37  ;;  %vm1470_vm5 = vcmp.eq.s32.totalorder %v2590_v51, %v2570_v37  ;;  %v1536_v47 = vld [vmem:[#allocation2] sm:$0x3] }
 0x162   : > { %v1314_v24 = vpop.f32.mrf.mxu0 }
 0x163   : > { %v1355_v25 = vpop.f32.mrf.mxu1 }
 0x164   : > { %v1316_v26 = vpop.f32.mrf.mxu0  ;;  %v2562_v35 = vadd.f32 %v1355_v25, %v1314_v24  ;;  %v1515_v25 = vrot.slane %v1510_v22, %v1514_v12 }
 0x165   : > { %v1357_v27 = vpop.f32.mrf.mxu1 }
 0x166   : > { %v1318_v28 = vpop.f32.mrf.mxu0  ;;  %v2564_v36 = vadd.f32 %v1357_v27, %v1316_v26  ;;  %v1802_v38 = vclamps-f32 %v2562_v35, 1.0  ;;  %v1519_v27 = vrot.slane %v1510_v22, %v1518_v13 }
 0x167   : > { %v1359_v29 = vpop.f32.mrf.mxu1  ;;  %v1523_v28 = vrot.slane %v1510_v22, %v1522_v16 }
 0x168   : > { %v1319_v30 = vpop.f32.mrf.mxu0  ;;  %v1803_v39 = vclamps-f32 %v2564_v36, 1.0  ;;  %v1471_v42 = vsel %vm1467_vm1, %v1802_v38, 0.0  ;;  %v1527_v29 = vrot.slane %v1510_v22, %v1526_v17 }
 0x169   : > { %v1360_v31 = vpop.f32.mrf.mxu1  ;;  %v1476_v52 = vsel %vm1475_vm3, %v1471_v42, 0.0 }
 0x16a   : > { %v1472_v43 = vsel %vm1468_vm2, %v1803_v39, 0.0 }
 0x16b   : > { %v1477_v53 = vsel %vm1475_vm3, %v1472_v43, 0.0 }
 0x16c   : > { %v1478_v60 = vadd.f32 %v1477_v53, %v1476_v52 }
 0x1a2   : > { %v1396_v44 = vpop.f32.mrf.mxu0 }
 0x1a3   : > { %v1437_v45 = vpop.f32.mrf.mxu1 }
 0x1a4   : > { %v1438_v48 = vadd.f32 %v1437_v45, %v1396_v44  ;;  %v1398_v49 = vpop.f32.mrf.mxu0 }
 0x1a5   : > { %v1439_v50 = vpop.f32.mrf.mxu1 }
 0x1a6   : > { %v1804_v54 = vclamps-f32 %v1438_v48, 1.0  ;;  %v1440_v55 = vadd.f32 %v1439_v50, %v1398_v49  ;;  %v1400_v56 = vpop.f32.mrf.mxu0 }
 0x1a7   : > { %v1441_v57 = vpop.f32.mrf.mxu1 }
 0x1a8   : > { %v1473_v58 = vsel %vm1469_vm4, %v1804_v54, 0.0  ;;  %v1805_v59 = vclamps-f32 %v1440_v55, 1.0  ;;  %v1401_v62 = vpop.f32.mrf.mxu0 }
 0x1a9   : > { %v1479_v61 = vsel %vm1475_vm3, %v1473_v58, 0.0  ;;  %v1442_v63 = vpop.f32.mrf.mxu1 }
 0x1aa   : > { %v1474_v0 = vsel %vm1470_vm5, %v1805_v59, 0.0  ;;  %v1480_v1 = vadd.f32 %v1479_v61, %v1478_v60  ;;  %v1582_v63 = vld [vmem:[#allocation4] sm:$0x3] }
 0x1ab   : > { %v1481_v2 = vsel %vm1475_vm3, %v1474_v0, 0.0 }
 0x1ac   : > { %v1482_v3 = vadd.f32 %v1481_v2, %v1480_v1 }
 0x1ae   : > { %1483 = vadd.xlane.f32.xlu0 %v1482_v3 }
 0x237   : > { %v1484_v4 = vpop.xlane.xlu0 %1483 }
 0x238   : > { %v1485_v5 = vmul.f32 %v1484_v4, %v1484_v4  ;;  %v1807_v15 = vadd.f32 0.87758255, %v1484_v4  ;;  %v1495_v18 = vmul.f32 0.87758255, %v1484_v4  ;;  %v1808_v24 = vadd.f32 -0.23971277, %v1484_v4 }
 0x23a   : > { %v1486_v6 = vsub.f32 1.0, %v1485_v5  ;;  %vm1499_vm8 = vcmp.le.f32.partialorder %v1807_v15, 0.0 }
 0x23c   : > { %v1487_v7 = vmax.f32 %v1486_v6, 0.0 }
 0x23e   : > { %2038 = vrsqrt.f32 %v1487_v7  ;;  %vm1490_vm6 = vcmp.eq.f32.partialorder %v1487_v7, inf  ;;  %v1493_v10 = vand.u32 2147483648, %v1487_v7  ;;  %vm1492_vm7 = vcmp.eq.f32.partialorder %v1487_v7, 0.0 }
 0x24b   : > { %v2039_v8 = vpop.eup %2038 }
 0x24c   : > { %v1489_v9 = vmul.f32 %v2039_v8, %v1487_v7 }
 0x24e   : > { %v1491_v11 = vsel %vm1490_vm6, %v1487_v7, %v1489_v9 }
 0x24f   : > { %v1494_v14 = vsel %vm1492_vm7, %v1493_v10, %v1491_v11 }
 0x250   : > { %v1496_v21 = vmul.f32 0.47942555, %v1494_v14 }
 0x252   : > { %v1497_v23 = vsub.f32 %v1495_v18, %v1496_v21 }
 0x254   : > { %v1501_v26 = vsel %vm1499_vm8, %v1808_v24, %v1497_v23 }
 0x255   : > { %v1502_v46 = vsel %vm1467_vm1, %v1501_v26, %v1802_v38  ;;  %v1503_v30 = vsel %vm1468_vm2, %v1501_v26, %v1803_v39  ;;  %v1504_v31 = vsel %vm1469_vm4, %v1501_v26, %v1804_v54  ;;  %v1505_v32 = vsel %vm1470_vm5, %v1501_v26, %v1805_v59 }
 0x256   : > { %v1506_v33 = vmul.f32 64.0, %v1502_v46  ;;  %v1507_v34 = vmul.f32 64.0, %v1503_v30  ;;  %v1508_v35 = vmul.f32 64.0, %v1504_v31  ;;  %v1509_v41 = vmul.f32 64.0, %v1505_v32 }
 0x258   : > { %v1532_v40 = vadd.f32 %v1515_v25, %v1506_v33  ;;  %v1533_v38 = vadd.f32 %v1519_v27, %v1507_v34  ;;  %v1534_v42 = vadd.f32 %v1523_v28, %v1508_v35  ;;  %v1535_v36 = vadd.f32 %v1527_v29, %v1509_v41  ;;  %v1547_v25 = vld [vmem:[#allocation3] sm:$0x3] }
 0x25a   : > { %v1537_v43 = vsel %vm1475_vm3, %v1532_v40, -inf  ;;  %v1538_v39 = vsel %vm1475_vm3, %v1533_v38, -inf  ;;  %v1539_v44 = vsel %vm1475_vm3, %v1534_v42, -inf  ;;  %v1540_v45 = vsel %vm1475_vm3, %v1535_v36, -inf }
 0x25b   : > { %v1541_v48 = vmax.f32 %v1537_v43, %v1538_v39  ;;  %v1542_v49 = vmax.f32 %v1539_v44, %v1540_v45  ;;  %v1583_v50 = vsel %vm1467_vm1, %v1532_v40, 0.0  ;;  %v1584_v52 = vsel %vm1468_vm2, %v1533_v38, 0.0 }
 0x25c   : > { %v1585_v53 = vsel %vm1469_vm4, %v1534_v42, 0.0  ;;  %v1587_v54 = vsel %vm1475_vm3, %v1583_v50, 0.0  ;;  %v1588_v55 = vsel %vm1475_vm3, %v1584_v52, 0.0  ;;  %v1586_v57 = vsel %vm1470_vm5, %v1535_v36, 0.0 }
 0x25d   : > { %v1543_v56 = vmax.f32 %v1541_v48, %v1542_v49  ;;  %v1589_v58 = vadd.f32 %v1588_v55, %v1587_v54  ;;  %v1590_v19 = vsel %vm1475_vm3, %v1585_v53, 0.0  ;;  %v1592_v20 = vsel %vm1475_vm3, %v1586_v57, 0.0 }
 0x25f   : > { %1544 = vmax.xlane.f32.xlu1 %v1543_v56  ;;  %v1591_v59 = vadd.f32 %v1590_v19, %v1589_v58 }
 0x261   : > { %v1593_v60 = vadd.f32 %v1592_v20, %v1591_v59 }
 0x263   : > { %1594 = vadd.xlane.f32.xlu0 %v1593_v60 }
 0x2e8   : > { %v1545_v61 = vpop.xlane.xlu1 %1544 }
 0x2e9   : > { %v1546_v62 = vmax.f32 %v1536_v47, %v1545_v61 }
 0x2eb   : > { %v1548_v0 = vsub.f32 %v1536_v47, %v1546_v62  ;;  %1581 = vst.msk [vmem:[#allocation2] sm:$0x3] %vm1579_vm9, %v1546_v62  ;;  %1554 = vperm.xlu1 %1844, %v1546_v62  }
 0x2ec   : > { %v1595_v37 = vpop.xlane.xlu0 %1594 }
 0x2ed   : > { %v1596_v51 = vadd.f32 %v1595_v37, %v1582_v63  ;;  %v1549_v23 = vmul.f32 1.442695, %v1548_v0 }
 0x2ef   : > { %1597 = vst.msk [vmem:[#allocation4] sm:$0x3] %vm1579_vm9, %v1596_v51 }
 0x366   : > { %v1555_v1 = vpop.permute.xlu1 %1554 }
 0x367   : > { %v1557_v2 = vsub.f32 %v1532_v40, %v1555_v1  ;;  %v1558_v3 = vsub.f32 %v1533_v38, %v1555_v1  ;;  %v1559_v4 = vsub.f32 %v1534_v42, %v1555_v1  ;;  %v1560_v5 = vsub.f32 %v1535_v36, %v1555_v1 }
 0x369   : > { %v1561_v6 = vmul.f32 1.442695, %v1557_v2  ;;  %v1563_v7 = vmul.f32 1.442695, %v1558_v3  ;;  %v1565_v8 = vmul.f32 1.442695, %v1559_v4 }
 0x36a   : > { %v1567_v9 = vmul.f32 1.442695, %v1560_v5 }
 0x36b   : > { %2040 = vpow2.f32 %v1561_v6 }
 0x36c   : > { %2042 = vpow2.f32 %v1563_v7 }
 0x36d   : > { %2044 = vpow2.f32 %v1565_v8 }
 0x36e   : > { %2046 = vpow2.f32 %v1567_v9 }
 0x36f   : > { %2048 = vpow2.f32 %v1549_v23 }
 0x378   : > { %v2041_v10 = vpop.eup %2040 }
 0x379   : > { %v2043_v11 = vpop.eup %2042  ;;  %v1569_v12 = vsel %vm1475_vm3, %v2041_v10, 0.0 }
 0x37a   : > { %v2045_v13 = vpop.eup %2044  ;;  %v1570_v14 = vsel %vm1475_vm3, %v2043_v11, 0.0 }
 0x37b   : > { %v2047_v15 = vpop.eup %2046  ;;  %v1571_v16 = vadd.f32 %v1570_v14, %v1569_v12  ;;  %v1572_v17 = vsel %vm1475_vm3, %v2045_v13, 0.0 }
 0x37c   : > { %v1574_v21 = vsel %vm1475_vm3, %v2047_v15, 0.0  ;;  %v2049_v24 = vpop.eup %2048 }
 0x37d   : > { %v1573_v18 = vadd.f32 %v1572_v17, %v1571_v16  ;;  %v1551_v26 = vmul.f32 %v2049_v24, %v1547_v25 }
 0x37f   : > { %v1575_v22 = vadd.f32 %v1574_v21, %v1573_v18 }
 0x381   : > { %1576 = vadd.xlane.f32.xlu1 %v1575_v22 }
 0x409   : > { %1601 = sbr.rel (%p1809_p10) target bundleno = 1268 (0x4f4), region = 67 }
 0x40a   : > { %v1577_v27 = vpop.xlane.xlu1 %1576 }
 0x40b   : > { %v1578_v28 = vadd.f32 %v1577_v27, %v1551_v26 }
 0x40d   : > { %1580 = vst.msk [vmem:[#allocation3] sm:$0x3] %vm1579_vm9, %v1578_v28 }
 0x40e   : > { %v1602_v30 = vld [vmem:[#allocation2] sm:$0x3]  ;;  %v1607_v32 = vld [vmem:[#allocation4] sm:$0x3] }
 0x414   : > { %v1603_v29 = vld [vmem:[#allocation3] sm:$0x3] }
 0x415   : > { %2050 = vlog2.f32 %v1603_v29 }
 0x422   : > { %v2051_v46 = vpop.eup %2050 }
 0x423   : > { %v1605_v31 = vmul.f32 0.6931472, %v2051_v46 }
 0x425   : > { %v1606_v33 = vadd.f32 %v1605_v31, %v1602_v30 }
 0x427   : > { %v1608_v34 = vsub.f32 %v1606_v33, %v1607_v32 }
 0x429   : > { %v1609_v35 = vsel %vm1579_vm9, %v1608_v34, 0.0 }
 0x42a   : > { %1610 = vadd.xlane.f32.xlu0 %v1609_v35 }
 0x4b3   : > { %v1611_v41 = vpop.xlane.xlu0 %1610 }
 0x4b4   : > { %v1612_v40 = vrot.slane %v1611_v41, 4 }
 0x4b6   : > { %v1613_v38 = vadd.f32 %v1612_v40, %v1611_v41 }
 0x4b8   : > { %v1614_v42 = vrot.slane %v1613_v38, 2 }
 0x4ba   : > { %v1615_v36 = vadd.f32 %v1614_v42, %v1613_v38 }
 0x4bc   : > { %v1616_v43 = vrot.slane %v1615_v36, 1 }
 0x4be   : > { %v1617_v39 = vadd.f32 %v1616_v43, %v1615_v36 }
 0x4c0   : > { %1813 = vpush %v1617_v39 }
 0x4f1   : > { %s1814_s18 = spop %1813 }
 0x4f2   : > { %v1619_v44 = vstv %s1814_s18 }
 0x4f3   : > { %1620 = vst [vmem:[%s2677_s4] sm:$0x1] %v1619_v44 }
 0x4f4 PF: > { %p11_p11 = scmp.ge.s32.totalorder %s2124_s19, 5   ;;  %s2678_s15 = smov %s2070_s16 }
 0x4f5   : > { %s2679_s16 = smov %s2133_s22  ;;  %s2680_s17 = smov %s2124_s19 }
 0x4f6   :  { %13 = sbr.rel (!%p11_p11) target bundleno = 2 (0x2), region = 101 }

</bundles_post_ra>
